<compile_context>
chip_gen: v6e
topology: v6e:2x2x1
jax: 0.10.0
libtpu: 0.0.40
codegen_flags: <defaults>
</compile_context>

<pallas_src>
import math

import jax
import jax.numpy as jnp
from jax.experimental import pallas as pl
from jax.experimental.pallas import tpu as pltpu


_TAPS = tuple((ky, kx) for ky in range(3) for kx in range(3))


def _round_up(x, m):
    return ((x + m - 1) // m) * m


def _conv_relu_kernel(x_ref, w_ref, b_ref, o_ref, col_ref):
    # x_ref  : (bn, H, W, Cin)      unpadded input tile
    # w_ref  : (9*Cin, Cout_p)      im2col-flattened weight (Cout padded to 128k)
    # b_ref  : (1, Cout_p)          bias, f32
    # o_ref  : (bn, H, W, Cout_p)   output tile (lane-dense last dim)
    # col_ref: (bn, H, W, 9*Cin)    im2col VMEM scratch
    bn, H, W, Cin = x_ref.shape
    Cout_p = o_ref.shape[-1]
    cdt = col_ref.dtype

    # Build im2col: channel block t = 3*ky + kx holds the input shifted by
    # (ky-1, kx-1); halo positions (conv padding=1) are written as zeros every
    # step (safe under megacore grid splitting -- no program_id gating).
    for t, (ky, kx) in enumerate(_TAPS):
        dy, dx = ky - 1, kx - 1
        i0, i1 = max(0, -dy), min(H, H - dy)
        j0, j1 = max(0, -dx), min(W, W - dx)
        cs = slice(t * Cin, (t + 1) * Cin)
        if i0 > 0:
            col_ref[:, 0:i0, :, cs] = jnp.zeros((bn, i0, W, Cin), cdt)
        if i1 < H:
            col_ref[:, i1:H, :, cs] = jnp.zeros((bn, H - i1, W, Cin), cdt)
        if i1 > i0:
            if j0 > 0:
                col_ref[:, i0:i1, 0:j0, cs] = jnp.zeros((bn, i1 - i0, j0, Cin), cdt)
            if j1 < W:
                col_ref[:, i0:i1, j1:W, cs] = jnp.zeros(
                    (bn, i1 - i0, W - j1, Cin), cdt)
            if j1 > j0:
                col_ref[:, i0:i1, j0:j1, cs] = \
                    x_ref[:, i0 + dy:i1 + dy, j0 + dx:j1 + dx, :]

    # One MXU matmul over the whole tile: (bn*H*W, 9*Cin) @ (9*Cin, Cout_p).
    lhs = col_ref[...].reshape(bn * H * W, 9 * Cin)
    acc = jnp.dot(lhs, w_ref[...], preferred_element_type=jnp.float32)
    acc = acc + b_ref[...]                 # (1, Cout_p) broadcast, f32
    out = jnp.maximum(acc, 0.0)            # ReLU in f32
    o_ref[...] = out.reshape(bn, H, W, Cout_p).astype(o_ref.dtype)


def _padded_plane_bytes(H, W, C, itemsize):
    # Actual VMEM footprint of one (H, W, C) image in a (bn, H, W, C) block:
    # the (8,128) layout tiling pads W up to 8 sublanes and C up to 128 lanes.
    return H * _round_up(max(W, 1), 8) * _round_up(max(C, 1), 128) * itemsize


def _pick_batch_tile(N, H, W, Cin, Cout_p, in_item, out_item,
                     budget_bytes=20 * 1024 * 1024):
    per_img = (2 * _padded_plane_bytes(H, W, Cin, in_item)         # in, dbl-buf
               + 2 * _padded_plane_bytes(H, W, Cout_p, out_item)   # out, dbl-buf
               + _padded_plane_bytes(H, W, 9 * Cin, in_item))      # im2col scratch
    fits = [d for d in range(1, N + 1)
            if N % d == 0 and d * per_img <= budget_bytes]
    if not fits:
        # TODO(synk): fall back to H-tiling here for very large H*W.
        return 1
    multi = [d for d in fits if N // d >= 2]   # >=2 steps => v7x can use both TCs
    return max(multi) if multi else max(fits)


def conv_relu_nhwc(x_nhwc, weight, bias, *, compute_dtype=None, batch_tile=None):
    """3x3 conv (padding=1, stride=1) + ReLU on an NHWC activation.

    x_nhwc : (N, H, W, Cin)
    weight : (Cout, Cin, 3, 3)   (PyTorch Conv2d layout)
    bias   : (Cout,)
    returns (N, H, W, Cout) in x_nhwc.dtype, fp32 accumulation.
    """
    N, H, W, Cin = x_nhwc.shape
    Cout = weight.shape[0]
    Cout_p = _round_up(Cout, 128)              # lane-dense (unmasked) stores
    out_dtype = x_nhwc.dtype

    xk = x_nhwc if compute_dtype is None else x_nhwc.astype(compute_dtype)
    # (Cout, Cin, 3, 3) -> (3, 3, Cin, Cout) -> (9*Cin, Cout_p)
    w = jnp.transpose(weight, (2, 3, 1, 0)).reshape(9 * Cin, Cout)
    w = jnp.pad(w, ((0, 0), (0, Cout_p - Cout))).astype(xk.dtype)
    b = jnp.pad(bias.astype(jnp.float32), (0, Cout_p - Cout)).reshape(1, Cout_p)

    in_item = jnp.dtype(xk.dtype).itemsize
    out_item = jnp.dtype(out_dtype).itemsize
    bn = batch_tile or _pick_batch_tile(N, H, W, Cin, Cout_p, in_item, out_item)
    assert N % bn == 0, (N, bn)

    out_p = pl.pallas_call(
        _conv_relu_kernel,
        out_shape=jax.ShapeDtypeStruct((N, H, W, Cout_p), out_dtype),
        grid_spec=pltpu.PrefetchScalarGridSpec(
            num_scalar_prefetch=0,
            grid=(N // bn,),
            in_specs=[
                pl.BlockSpec((bn, H, W, Cin), lambda n: (n, 0, 0, 0)),
                pl.BlockSpec((9 * Cin, Cout_p), lambda n: (0, 0)),
                pl.BlockSpec((1, Cout_p), lambda n: (0, 0)),
            ],
            out_specs=pl.BlockSpec((bn, H, W, Cout_p), lambda n: (n, 0, 0, 0)),
            scratch_shapes=[pltpu.VMEM((bn, H, W, 9 * Cin), xk.dtype)],
        ),
        compiler_params=pltpu.CompilerParams(
            dimension_semantics=("parallel",),
            vmem_limit_bytes=48 * 1024 * 1024,
        ),
    )(xk, w, b)

    return out_p[..., :Cout] if Cout_p != Cout else out_p


def conv_relu(x_nchw, weight, bias, *, compute_dtype=None):
    """PyTorch-facing NCHW wrapper, matches nn.Conv2d(.., 3, padding=1) + ReLU.

    Prefer conv_relu_nhwc between layers to avoid HBM transpose round trips.
    """
    x_nhwc = jnp.transpose(x_nchw, (0, 2, 3, 1))
    out_nhwc = conv_relu_nhwc(x_nhwc, weight, bias, compute_dtype=compute_dtype)
    return jnp.transpose(out_nhwc, (0, 3, 1, 2))


def init_conv_relu_params(key, in_channels, out_channels):
    """Deterministic init matching nn.Conv2d default (kaiming-uniform bounds)."""
    k_w, k_b = jax.random.split(key)
    fan_in = in_channels * 3 * 3
    bound = 1.0 / math.sqrt(fan_in)
    weight = jax.random.uniform(
        k_w, (out_channels, in_channels, 3, 3),
        minval=-bound, maxval=bound, dtype=jnp.float32)
    bias = jax.random.uniform(
        k_b, (out_channels,), minval=-bound, maxval=bound, dtype=jnp.float32)
    return weight, bias


def _reference_conv_relu(x_nchw, weight, bias):
    out = jax.lax.conv_general_dilated(
        x_nchw, weight, window_strides=(1, 1), padding=((1, 1), (1, 1)),
        dimension_numbers=("NCHW", "OIHW", "NCHW"),
        precision=jax.lax.Precision.HIGHEST)
    return jnp.maximum(out + bias[None, :, None, None], 0.0)


if __name__ == "__main__":
    key = jax.random.PRNGKey(0)
    k_x, k_p, k_x2, k_p2 = jax.random.split(key, 4)

    # Case 1: module-consistent small NCHW shapes (Cout < 128 -> pad/slice path).
    N, Cin, H, W = 2, 4, 16, 16
    Cout = 8
    x = jax.random.normal(k_x, (N, Cin, H, W), dtype=jnp.float32)
    weight, bias = init_conv_relu_params(k_p, Cin, Cout)

    out = jax.block_until_ready(conv_relu(x, weight, bias))
    assert out.shape == (N, Cout, H, W), out.shape
    assert out.dtype == jnp.float32
    assert bool(jnp.all(out >= 0.0))               # ReLU post-condition
    ref = _reference_conv_relu(x, weight, bias)
    max_err = float(jnp.max(jnp.abs(out - ref)))
    assert bool(jnp.allclose(out, ref, atol=2e-2, rtol=2e-2)), max_err

    # Case 2: Cout is already a multiple of 128 (no channel pad, no slice).
    N2, Cin2, H2, W2, Cout2 = 1, 8, 8, 8, 128
    x2 = jax.random.normal(k_x2, (N2, Cin2, H2, W2), dtype=jnp.float32)
    w2, b2 = init_conv_relu_params(k_p2, Cin2, Cout2)
    out2 = jax.block_until_ready(conv_relu(x2, w2, b2))
    ref2 = _reference_conv_relu(x2, w2, b2)
    assert out2.shape == (N2, Cout2, H2, W2)
    assert bool(jnp.allclose(out2, ref2, atol=2e-2, rtol=2e-2))

    print("KERNEL_OK")
</pallas_src>

<mosaic_0001>
module attributes {stable_mosaic.version = 11 : i64} {
  func.func @_conv_relu_kernel(%arg0: i32, %arg1: memref<1x16x16x4xf32, #tpu.memory_space<vmem>>, %arg2: memref<36x128xf32, #tpu.memory_space<vmem>>, %arg3: memref<1x128xf32, #tpu.memory_space<vmem>>, %arg4: memref<1x16x16x128xf32, #tpu.memory_space<vmem>>, %arg5: memref<1x16x16x36xf32, #tpu.memory_space<vmem>>) attributes {dimension_semantics = [#tpu.dimension_semantics<parallel>], iteration_bounds = array<i64: 2>, scalar_prefetch = 0 : i64, scratch_operands = 1 : i64, tpu.core_type = #tpu.core_type<tc>, window_params = [{transform_indices = @transform_0, window_bounds = array<i64: 1, 16, 16, 4>}, {pipeline_mode = #tpu.pipeline_mode<synchronous>, transform_indices = @transform_1, window_bounds = array<i64: 36, 128>}, {pipeline_mode = #tpu.pipeline_mode<synchronous>, transform_indices = @transform_2, window_bounds = array<i64: 1, 128>}, {transform_indices = @transform_3, window_bounds = array<i64: 1, 16, 16, 128>}]} {
    %cst = arith.constant 0.000000e+00 : f32
    %0 = vector.broadcast %cst : f32 to vector<1x1x16x4xf32>
    %c0 = arith.constant 0 : index
    %c0_0 = arith.constant 0 : index
    %c0_1 = arith.constant 0 : index
    %c0_2 = arith.constant 0 : index
    %1 = vector.load %arg5[%c0, %c0_0, %c0_1, %c0_2] : memref<1x16x16x36xf32, #tpu.memory_space<vmem>>, vector<1x1x16x4xf32>
    tpu.vector_store %arg5[%c0, %c0_0, %c0_1, %c0_2], %0 {strides = array<i32>} : memref<1x16x16x36xf32, #tpu.memory_space<vmem>>, vector<1x1x16x4xf32>,
    %cst_3 = arith.constant 0.000000e+00 : f32
    %2 = vector.broadcast %cst_3 : f32 to vector<1x15x1x4xf32>
    %c0_4 = arith.constant 0 : index
    %c1 = arith.constant 1 : index
    %c0_5 = arith.constant 0 : index
    %c0_6 = arith.constant 0 : index
    %3 = vector.load %arg5[%c0_4, %c1, %c0_5, %c0_6] : memref<1x16x16x36xf32, #tpu.memory_space<vmem>>, vector<1x15x1x4xf32>
    tpu.vector_store %arg5[%c0_4, %c1, %c0_5, %c0_6], %2 {strides = array<i32>} : memref<1x16x16x36xf32, #tpu.memory_space<vmem>>, vector<1x15x1x4xf32>,
    %c0_7 = arith.constant 0 : index
    %c0_8 = arith.constant 0 : index
    %c0_9 = arith.constant 0 : index
    %c0_10 = arith.constant 0 : index
    %4 = vector.load %arg1[%c0_7, %c0_8, %c0_9, %c0_10] : memref<1x16x16x4xf32, #tpu.memory_space<vmem>>, vector<1x15x15x4xf32>
    %c0_11 = arith.constant 0 : index
    %c1_12 = arith.constant 1 : index
    %c1_13 = arith.constant 1 : index
    %c0_14 = arith.constant 0 : index
    %5 = vector.load %arg5[%c0_11, %c1_12, %c1_13, %c0_14] : memref<1x16x16x36xf32, #tpu.memory_space<vmem>>, vector<1x15x15x4xf32>
    tpu.vector_store %arg5[%c0_11, %c1_12, %c1_13, %c0_14], %4 {strides = array<i32>} : memref<1x16x16x36xf32, #tpu.memory_space<vmem>>, vector<1x15x15x4xf32>,
    %cst_15 = arith.constant 0.000000e+00 : f32
    %6 = vector.broadcast %cst_15 : f32 to vector<1x1x16x4xf32>
    %c0_16 = arith.constant 0 : index
    %c0_17 = arith.constant 0 : index
    %c0_18 = arith.constant 0 : index
    %c4 = arith.constant 4 : index
    %7 = vector.load %arg5[%c0_16, %c0_17, %c0_18, %c4] : memref<1x16x16x36xf32, #tpu.memory_space<vmem>>, vector<1x1x16x4xf32>
    tpu.vector_store %arg5[%c0_16, %c0_17, %c0_18, %c4], %6 {strides = array<i32>} : memref<1x16x16x36xf32, #tpu.memory_space<vmem>>, vector<1x1x16x4xf32>,
    %c0_19 = arith.constant 0 : index
    %c0_20 = arith.constant 0 : index
    %c0_21 = arith.constant 0 : index
    %c0_22 = arith.constant 0 : index
    %8 = vector.load %arg1[%c0_19, %c0_20, %c0_21, %c0_22] : memref<1x16x16x4xf32, #tpu.memory_space<vmem>>, vector<1x15x16x4xf32>
    %c0_23 = arith.constant 0 : index
    %c1_24 = arith.constant 1 : index
    %c0_25 = arith.constant 0 : index
    %c4_26 = arith.constant 4 : index
    %9 = vector.load %arg5[%c0_23, %c1_24, %c0_25, %c4_26] : memref<1x16x16x36xf32, #tpu.memory_space<vmem>>, vector<1x15x16x4xf32>
    tpu.vector_store %arg5[%c0_23, %c1_24, %c0_25, %c4_26], %8 {strides = array<i32>} : memref<1x16x16x36xf32, #tpu.memory_space<vmem>>, vector<1x15x16x4xf32>,
    %cst_27 = arith.constant 0.000000e+00 : f32
    %10 = vector.broadcast %cst_27 : f32 to vector<1x1x16x4xf32>
    %c0_28 = arith.constant 0 : index
    %c0_29 = arith.constant 0 : index
    %c0_30 = arith.constant 0 : index
    %c8 = arith.constant 8 : index
    %11 = vector.load %arg5[%c0_28, %c0_29, %c0_30, %c8] : memref<1x16x16x36xf32, #tpu.memory_space<vmem>>, vector<1x1x16x4xf32>
    tpu.vector_store %arg5[%c0_28, %c0_29, %c0_30, %c8], %10 {strides = array<i32>} : memref<1x16x16x36xf32, #tpu.memory_space<vmem>>, vector<1x1x16x4xf32>,
    %cst_31 = arith.constant 0.000000e+00 : f32
    %12 = vector.broadcast %cst_31 : f32 to vector<1x15x1x4xf32>
    %c0_32 = arith.constant 0 : index
    %c1_33 = arith.constant 1 : index
    %c15 = arith.constant 15 : index
    %c8_34 = arith.constant 8 : index
    %13 = vector.load %arg5[%c0_32, %c1_33, %c15, %c8_34] : memref<1x16x16x36xf32, #tpu.memory_space<vmem>>, vector<1x15x1x4xf32>
    tpu.vector_store %arg5[%c0_32, %c1_33, %c15, %c8_34], %12 {strides = array<i32>} : memref<1x16x16x36xf32, #tpu.memory_space<vmem>>, vector<1x15x1x4xf32>,
    %c0_35 = arith.constant 0 : index
    %c0_36 = arith.constant 0 : index
    %c1_37 = arith.constant 1 : index
    %c0_38 = arith.constant 0 : index
    %14 = vector.load %arg1[%c0_35, %c0_36, %c1_37, %c0_38] : memref<1x16x16x4xf32, #tpu.memory_space<vmem>>, vector<1x15x15x4xf32>
    %c0_39 = arith.constant 0 : index
    %c1_40 = arith.constant 1 : index
    %c0_41 = arith.constant 0 : index
    %c8_42 = arith.constant 8 : index
    %15 = vector.load %arg5[%c0_39, %c1_40, %c0_41, %c8_42] : memref<1x16x16x36xf32, #tpu.memory_space<vmem>>, vector<1x15x15x4xf32>
    tpu.vector_store %arg5[%c0_39, %c1_40, %c0_41, %c8_42], %14 {strides = array<i32>} : memref<1x16x16x36xf32, #tpu.memory_space<vmem>>, vector<1x15x15x4xf32>,
    %cst_43 = arith.constant 0.000000e+00 : f32
    %16 = vector.broadcast %cst_43 : f32 to vector<1x16x1x4xf32>
    %c0_44 = arith.constant 0 : index
    %c0_45 = arith.constant 0 : index
    %c0_46 = arith.constant 0 : index
    %c12 = arith.constant 12 : index
    %17 = vector.load %arg5[%c0_44, %c0_45, %c0_46, %c12] : memref<1x16x16x36xf32, #tpu.memory_space<vmem>>, vector<1x16x1x4xf32>
    tpu.vector_store %arg5[%c0_44, %c0_45, %c0_46, %c12], %16 {strides = array<i32>} : memref<1x16x16x36xf32, #tpu.memory_space<vmem>>, vector<1x16x1x4xf32>,
    %c0_47 = arith.constant 0 : index
    %c0_48 = arith.constant 0 : index
    %c0_49 = arith.constant 0 : index
    %c0_50 = arith.constant 0 : index
    %18 = vector.load %arg1[%c0_47, %c0_48, %c0_49, %c0_50] : memref<1x16x16x4xf32, #tpu.memory_space<vmem>>, vector<1x16x15x4xf32>
    %c0_51 = arith.constant 0 : index
    %c0_52 = arith.constant 0 : index
    %c1_53 = arith.constant 1 : index
    %c12_54 = arith.constant 12 : index
    %19 = vector.load %arg5[%c0_51, %c0_52, %c1_53, %c12_54] : memref<1x16x16x36xf32, #tpu.memory_space<vmem>>, vector<1x16x15x4xf32>
    tpu.vector_store %arg5[%c0_51, %c0_52, %c1_53, %c12_54], %18 {strides = array<i32>} : memref<1x16x16x36xf32, #tpu.memory_space<vmem>>, vector<1x16x15x4xf32>,
    %c0_55 = arith.constant 0 : index
    %c0_56 = arith.constant 0 : index
    %c0_57 = arith.constant 0 : index
    %c0_58 = arith.constant 0 : index
    %20 = vector.load %arg1[%c0_55, %c0_56, %c0_57, %c0_58] : memref<1x16x16x4xf32, #tpu.memory_space<vmem>>, vector<1x16x16x4xf32>
    %c0_59 = arith.constant 0 : index
    %c0_60 = arith.constant 0 : index
    %c0_61 = arith.constant 0 : index
    %c16 = arith.constant 16 : index
    %21 = vector.load %arg5[%c0_59, %c0_60, %c0_61, %c16] : memref<1x16x16x36xf32, #tpu.memory_space<vmem>>, vector<1x16x16x4xf32>
    tpu.vector_store %arg5[%c0_59, %c0_60, %c0_61, %c16], %20 {strides = array<i32>} : memref<1x16x16x36xf32, #tpu.memory_space<vmem>>, vector<1x16x16x4xf32>,
    %cst_62 = arith.constant 0.000000e+00 : f32
    %22 = vector.broadcast %cst_62 : f32 to vector<1x16x1x4xf32>
    %c0_63 = arith.constant 0 : index
    %c0_64 = arith.constant 0 : index
    %c15_65 = arith.constant 15 : index
    %c20 = arith.constant 20 : index
    %23 = vector.load %arg5[%c0_63, %c0_64, %c15_65, %c20] : memref<1x16x16x36xf32, #tpu.memory_space<vmem>>, vector<1x16x1x4xf32>
    tpu.vector_store %arg5[%c0_63, %c0_64, %c15_65, %c20], %22 {strides = array<i32>} : memref<1x16x16x36xf32, #tpu.memory_space<vmem>>, vector<1x16x1x4xf32>,
    %c0_66 = arith.constant 0 : index
    %c0_67 = arith.constant 0 : index
    %c1_68 = arith.constant 1 : index
    %c0_69 = arith.constant 0 : index
    %24 = vector.load %arg1[%c0_66, %c0_67, %c1_68, %c0_69] : memref<1x16x16x4xf32, #tpu.memory_space<vmem>>, vector<1x16x15x4xf32>
    %c0_70 = arith.constant 0 : index
    %c0_71 = arith.constant 0 : index
    %c0_72 = arith.constant 0 : index
    %c20_73 = arith.constant 20 : index
    %25 = vector.load %arg5[%c0_70, %c0_71, %c0_72, %c20_73] : memref<1x16x16x36xf32, #tpu.memory_space<vmem>>, vector<1x16x15x4xf32>
    tpu.vector_store %arg5[%c0_70, %c0_71, %c0_72, %c20_73], %24 {strides = array<i32>} : memref<1x16x16x36xf32, #tpu.memory_space<vmem>>, vector<1x16x15x4xf32>,
    %cst_74 = arith.constant 0.000000e+00 : f32
    %26 = vector.broadcast %cst_74 : f32 to vector<1x1x16x4xf32>
    %c0_75 = arith.constant 0 : index
    %c15_76 = arith.constant 15 : index
    %c0_77 = arith.constant 0 : index
    %c24 = arith.constant 24 : index
    %27 = vector.load %arg5[%c0_75, %c15_76, %c0_77, %c24] : memref<1x16x16x36xf32, #tpu.memory_space<vmem>>, vector<1x1x16x4xf32>
    tpu.vector_store %arg5[%c0_75, %c15_76, %c0_77, %c24], %26 {strides = array<i32>} : memref<1x16x16x36xf32, #tpu.memory_space<vmem>>, vector<1x1x16x4xf32>,
    %cst_78 = arith.constant 0.000000e+00 : f32
    %28 = vector.broadcast %cst_78 : f32 to vector<1x15x1x4xf32>
    %c0_79 = arith.constant 0 : index
    %c0_80 = arith.constant 0 : index
    %c0_81 = arith.constant 0 : index
    %c24_82 = arith.constant 24 : index
    %29 = vector.load %arg5[%c0_79, %c0_80, %c0_81, %c24_82] : memref<1x16x16x36xf32, #tpu.memory_space<vmem>>, vector<1x15x1x4xf32>
    tpu.vector_store %arg5[%c0_79, %c0_80, %c0_81, %c24_82], %28 {strides = array<i32>} : memref<1x16x16x36xf32, #tpu.memory_space<vmem>>, vector<1x15x1x4xf32>,
    %c0_83 = arith.constant 0 : index
    %c1_84 = arith.constant 1 : index
    %c0_85 = arith.constant 0 : index
    %c0_86 = arith.constant 0 : index
    %30 = vector.load %arg1[%c0_83, %c1_84, %c0_85, %c0_86] : memref<1x16x16x4xf32, #tpu.memory_space<vmem>>, vector<1x15x15x4xf32>
    %c0_87 = arith.constant 0 : index
    %c0_88 = arith.constant 0 : index
    %c1_89 = arith.constant 1 : index
    %c24_90 = arith.constant 24 : index
    %31 = vector.load %arg5[%c0_87, %c0_88, %c1_89, %c24_90] : memref<1x16x16x36xf32, #tpu.memory_space<vmem>>, vector<1x15x15x4xf32>
    tpu.vector_store %arg5[%c0_87, %c0_88, %c1_89, %c24_90], %30 {strides = array<i32>} : memref<1x16x16x36xf32, #tpu.memory_space<vmem>>, vector<1x15x15x4xf32>,
    %cst_91 = arith.constant 0.000000e+00 : f32
    %32 = vector.broadcast %cst_91 : f32 to vector<1x1x16x4xf32>
    %c0_92 = arith.constant 0 : index
    %c15_93 = arith.constant 15 : index
    %c0_94 = arith.constant 0 : index
    %c28 = arith.constant 28 : index
    %33 = vector.load %arg5[%c0_92, %c15_93, %c0_94, %c28] : memref<1x16x16x36xf32, #tpu.memory_space<vmem>>, vector<1x1x16x4xf32>
    tpu.vector_store %arg5[%c0_92, %c15_93, %c0_94, %c28], %32 {strides = array<i32>} : memref<1x16x16x36xf32, #tpu.memory_space<vmem>>, vector<1x1x16x4xf32>,
    %c0_95 = arith.constant 0 : index
    %c1_96 = arith.constant 1 : index
    %c0_97 = arith.constant 0 : index
    %c0_98 = arith.constant 0 : index
    %34 = vector.load %arg1[%c0_95, %c1_96, %c0_97, %c0_98] : memref<1x16x16x4xf32, #tpu.memory_space<vmem>>, vector<1x15x16x4xf32>
    %c0_99 = arith.constant 0 : index
    %c0_100 = arith.constant 0 : index
    %c0_101 = arith.constant 0 : index
    %c28_102 = arith.constant 28 : index
    %35 = vector.load %arg5[%c0_99, %c0_100, %c0_101, %c28_102] : memref<1x16x16x36xf32, #tpu.memory_space<vmem>>, vector<1x15x16x4xf32>
    tpu.vector_store %arg5[%c0_99, %c0_100, %c0_101, %c28_102], %34 {strides = array<i32>} : memref<1x16x16x36xf32, #tpu.memory_space<vmem>>, vector<1x15x16x4xf32>,
    %cst_103 = arith.constant 0.000000e+00 : f32
    %36 = vector.broadcast %cst_103 : f32 to vector<1x1x16x4xf32>
    %c0_104 = arith.constant 0 : index
    %c15_105 = arith.constant 15 : index
    %c0_106 = arith.constant 0 : index
    %c32 = arith.constant 32 : index
    %37 = vector.load %arg5[%c0_104, %c15_105, %c0_106, %c32] : memref<1x16x16x36xf32, #tpu.memory_space<vmem>>, vector<1x1x16x4xf32>
    tpu.vector_store %arg5[%c0_104, %c15_105, %c0_106, %c32], %36 {strides = array<i32>} : memref<1x16x16x36xf32, #tpu.memory_space<vmem>>, vector<1x1x16x4xf32>,
    %cst_107 = arith.constant 0.000000e+00 : f32
    %38 = vector.broadcast %cst_107 : f32 to vector<1x15x1x4xf32>
    %c0_108 = arith.constant 0 : index
    %c0_109 = arith.constant 0 : index
    %c15_110 = arith.constant 15 : index
    %c32_111 = arith.constant 32 : index
    %39 = vector.load %arg5[%c0_108, %c0_109, %c15_110, %c32_111] : memref<1x16x16x36xf32, #tpu.memory_space<vmem>>, vector<1x15x1x4xf32>
    tpu.vector_store %arg5[%c0_108, %c0_109, %c15_110, %c32_111], %38 {strides = array<i32>} : memref<1x16x16x36xf32, #tpu.memory_space<vmem>>, vector<1x15x1x4xf32>,
    %c0_112 = arith.constant 0 : index
    %c1_113 = arith.constant 1 : index
    %c1_114 = arith.constant 1 : index
    %c0_115 = arith.constant 0 : index
    %40 = vector.load %arg1[%c0_112, %c1_113, %c1_114, %c0_115] : memref<1x16x16x4xf32, #tpu.memory_space<vmem>>, vector<1x15x15x4xf32>
    %c0_116 = arith.constant 0 : index
    %c0_117 = arith.constant 0 : index
    %c0_118 = arith.constant 0 : index
    %c32_119 = arith.constant 32 : index
    %41 = vector.load %arg5[%c0_116, %c0_117, %c0_118, %c32_119] : memref<1x16x16x36xf32, #tpu.memory_space<vmem>>, vector<1x15x15x4xf32>
    tpu.vector_store %arg5[%c0_116, %c0_117, %c0_118, %c32_119], %40 {strides = array<i32>} : memref<1x16x16x36xf32, #tpu.memory_space<vmem>>, vector<1x15x15x4xf32>,
    %c0_120 = arith.constant 0 : index
    %c0_121 = arith.constant 0 : index
    %c0_122 = arith.constant 0 : index
    %c0_123 = arith.constant 0 : index
    %42 = vector.load %arg5[%c0_120, %c0_121, %c0_122, %c0_123] : memref<1x16x16x36xf32, #tpu.memory_space<vmem>>, vector<1x16x16x36xf32>
    %43 = vector.shape_cast %42 : vector<1x16x16x36xf32> to vector<256x36xf32>
    %c0_124 = arith.constant 0 : index
    %c0_125 = arith.constant 0 : index
    %44 = vector.load %arg2[%c0_124, %c0_125] : memref<36x128xf32, #tpu.memory_space<vmem>>, vector<36x128xf32>
    %cst_126 = arith.constant dense<0.000000e+00> : vector<256x128xf32>
    %45 = tpu.matmul %43, %44, %cst_126 {dimension_numbers = #tpu.dot_dimension_numbers<[1], [0], [0], [1], [0, 0, 1, 1], [], []>} : vector<256x36xf32>, vector<36x128xf32>, vector<256x128xf32> -> vector<256x128xf32>
    %c0_127 = arith.constant 0 : index
    %c0_128 = arith.constant 0 : index
    %46 = vector.load %arg3[%c0_127, %c0_128] : memref<1x128xf32, #tpu.memory_space<vmem>>, vector<1x128xf32>
    %47 = vector.broadcast %46 : vector<1x128xf32> to vector<256x128xf32>
    %48 = arith.addf %45, %47 : vector<256x128xf32>
    %cst_129 = arith.constant 0.000000e+00 : f32
    %49 = vector.broadcast %cst_129 : f32 to vector<256x128xf32>
    %50 = arith.maximumf %48, %49 : vector<256x128xf32>
    %51 = vector.shape_cast %50 : vector<256x128xf32> to vector<1x16x16x128xf32>
    %c0_130 = arith.constant 0 : index
    %c0_131 = arith.constant 0 : index
    %c0_132 = arith.constant 0 : index
    %c0_133 = arith.constant 0 : index
    %52 = vector.load %arg4[%c0_130, %c0_131, %c0_132, %c0_133] : memref<1x16x16x128xf32, #tpu.memory_space<vmem>>, vector<1x16x16x128xf32>
    tpu.vector_store %arg4[%c0_130, %c0_131, %c0_132, %c0_133], %51 {strides = array<i32>} : memref<1x16x16x128xf32, #tpu.memory_space<vmem>>, vector<1x16x16x128xf32>,
    return
  }
  func.func @transform_0(%arg0: i32) -> (i32, i32, i32, i32) {
    %c0_i32 = arith.constant 0 : i32
    %c0_i32_0 = arith.constant 0 : i32
    %c0_i32_1 = arith.constant 0 : i32
    %c0_i32_2 = arith.constant 0 : i32
    return %arg0, %c0_i32, %c0_i32_0, %c0_i32_1 : i32, i32, i32, i32
  }
  func.func @transform_1(%arg0: i32) -> (i32, i32) {
    %c0_i32 = arith.constant 0 : i32
    %c0_i32_0 = arith.constant 0 : i32
    %c0_i32_1 = arith.constant 0 : i32
    return %c0_i32, %c0_i32_0 : i32, i32
  }
  func.func @transform_2(%arg0: i32) -> (i32, i32) {
    %c0_i32 = arith.constant 0 : i32
    %c0_i32_0 = arith.constant 0 : i32
    %c0_i32_1 = arith.constant 0 : i32
    return %c0_i32, %c0_i32_0 : i32, i32
  }
  func.func @transform_3(%arg0: i32) -> (i32, i32, i32, i32) {
    %c0_i32 = arith.constant 0 : i32
    %c0_i32_0 = arith.constant 0 : i32
    %c0_i32_1 = arith.constant 0 : i32
    %c0_i32_2 = arith.constant 0 : i32
    return %arg0, %c0_i32, %c0_i32_0, %c0_i32_1 : i32, i32, i32, i32
  }
}

</mosaic_0001>

<bundles_post_ra>
// kernel: tpu_custom_call.1
= control target key start
LH: loop header
LB: loop body
LE: loop exit
PB: predicated region body
PF: predicated region fallthrough
CT: control target
= control target key end

     0   :  { %8 = vsyncpa [#allocation4], 0  ;;  %s4000_s0 = inlined_call_operand.vmem [shape: f32[2,16,16,4], index: 0, kind: input, shape index: {}]   ;;  %s4001_s1 = inlined_call_operand.vmem [shape: f32[36,128], index: 1, kind: input, shape index: {}]   ;;  %s4002_s2 = inlined_call_operand.vmem [shape: f32[1,128], index: 2, kind: input, shape index: {}]   ;;  %s4003_s3 = inlined_call_operand.hbm [shape: f32[2,16,16,128], index: 3, kind: output, shape index: {}]  }
   0x1   :  { %10 = vsyncpa [#allocation4 + $0x1], 0  ;;  %s2728_s12 = smov 0   ;;  %s2730_s13 = smov 0  }
   0x2   :  { %s2732_s14 = smov 0   ;;  %s2734_s15 = smov 0  }
   0x3 LB: > { %s2749_s16 = sadd.s32 4294967295, %s2695_s15   ;;  %s2343_s17 = sadd.s32 4294967294, %s2695_s15   ;;  %s2695_s15 = sphi %s2734_s15, %s4009_s15   ;;  %s2691_s14 = sphi %s2732_s14, %s4008_s14   ;;  %s2687_s13 = sphi %s2730_s13, %s4007_s13   ;;  %s2683_s12 = sphi %s2728_s12, %s4006_s12  }
   0x4   : > { %s2753_s18 = sadd.s32 1, %s2695_s15   ;;  %s91_s19 = sadd.s32 1, %s2691_s14 }
   0x5   : > { %s88_s20 = ssub.s32 %s2695_s15, %s2753_s18  ;;  %p101_p0 = scmp.ne.s32.totalorder %s2691_s14, %s2687_s13 }
   0x6   : > { %p89_p1 = scmp.eq.s32.totalorder %s88_s20, 0  ;;  %p102_p2 = scmp.eq.s32.totalorder %s2749_s16, 1 }
   0x7   : > { %p107_p3 = scmp.ne.s32.totalorder %s2687_s13, %s2683_s12  ;;  %p108_p4 = scmp.eq.s32.totalorder %s2343_s17, 1 }
   0x8   : > { %s2764_s21 = scalar_select %p89_p1, %s2691_s14, %s91_s19  }
   0x9   : > { %p2766_p5 = por %p102_p2, %p101_p0  ;;  %p2770_p6 = por %p108_p4, %p107_p3 }
   0xa   : > { %p2346_p7 = scmp.ge.s32.totalorder %s2695_s15, 1  ;;  %p140_p8 = scmp.lt.s32.totalorder %s2695_s15, 3 }
   0xc   : > { %p141_p9 = pnand %p2346_p7, %p140_p8 }
   0xd   : > { %p164_p10 = scmp.lt.s32.totalorder (!%p141_p9), %s2749_s16, 1  ;;  %s2698_s29 = smov (!%p141_p9), 4  }
   0xe   : > { %144 = sbr.rel (%p141_p9) target bundleno = 850 (0x352), region = 32  ;;  %s2699_s30 = smov (!%p141_p9), 8  }
   0xf   : > { %s2700_s4 = smov (!%p141_p9), 12   ;;  %s2701_s5 = smov (!%p141_p9), 16  }
  0x10   : > { %s2702_s6 = smov (!%p141_p9), 20   ;;  %s2703_s7 = smov (!%p141_p9), 24  }
  0x11   : > { %s2704_s8 = smov (!%p141_p9), 28   ;;  %s2705_s19 = smov (!%p141_p9), 32  }
  0x12   : > { %s2706_s20 = smov (!%p141_p9), [#allocation3]  }
  0x13   : > { %vm169_vm0 = vcmask 31744   ;;  %vm173_vm1 = vcmask 24576   ;;  %v2697_v0 = vmov 0.0   ;;  %vm250_vm2 = vcmask 64544   ;;  %s165_s24 = scalar_select %p164_p10, %s2749_s16, 1 }
  0x14   : > { %175 = vst.msk [vmem:[#allocation2 + $0x20] sm:$0x1] %vm173_vm1, %v2697_v0  ;;  %174 = vst.msk [vmem:[#allocation2 + $0x10] sm:$0x1] %vm173_vm1, %v2697_v0  ;;  %vm220_vm3 = vcmask 30720   ;;  %vm433_vm4 = vcmask 97344  }
  0x15   : > { %170 = vst.msk [vmem:[#allocation2] sm:$0xff] %vm169_vm0, %v2697_v0  ;;  %171 = vst.msk [vmem:[#allocation2 + $0x8] sm:$0xff] %vm169_vm0, %v2697_v0  ;;  %s2479_s25 = sshll.u32 %s165_s24, 8  ;;  %vm633_vm5 = vcmask 122976   ;;  %vm436_vm6 = vcmask 90176   ;;  %vm603_vm7 = vcmask 96320  }
  0x16   : > { %176 = vst.msk [vmem:[#allocation2 + $0x30] sm:$0x1] %vm173_vm1, %v2697_v0  ;;  %177 = vst.msk [vmem:[#allocation2 + $0x40] sm:$0x1] %vm173_vm1, %v2697_v0  ;;  %s2821_s28 = scalar_lea.vmem %s4000_s0, %s2479_s25  ;;  %vm1974_vm8 = vcmask 1043456   ;;  %vm812_vm9 = vcmask 129120  }
  0x17   : > { %178 = vst.msk [vmem:[#allocation2 + $0x50] sm:$0x1] %vm173_vm1, %v2697_v0  ;;  %179 = vst.msk [vmem:[#allocation2 + $0x60] sm:$0x1] %vm173_vm1, %v2697_v0  ;;  %v2824_v1 = vld [vmem:[%s2821_s28 + $0x10] sm:$0xff]  ;;  %v2827_v2 = vld [vmem:[%s2821_s28] sm:$0xff] }
  0x18   : > { %180 = vst.msk [vmem:[#allocation2 + $0x70] sm:$0x1] %vm173_vm1, %v2697_v0  ;;  %181 = vst.msk [vmem:[#allocation2 + $0x80] sm:$0x1] %vm173_vm1, %v2697_v0  ;;  %317 = vrot.lane.b32.xlu1 %v2824_v1, %s2698_s29  ;;  %313 = vrot.lane.b32.xlu0 %v2827_v2, %s2698_s29  ;;  %v2834_v3 = vld [vmem:[%s2821_s28 + $0x18] sm:$0xff]  ;;  %v2841_v4 = vld [vmem:[%s2821_s28 + $0x8] sm:$0xff] }
  0x19   : > { %182 = vst.msk [vmem:[#allocation2 + $0x90] sm:$0x1] %vm173_vm1, %v2697_v0  ;;  %183 = vst.msk [vmem:[#allocation2 + $0xa0] sm:$0x1] %vm173_vm1, %v2697_v0  ;;  %v2844_v5 = vld [vmem:[%s2821_s28 + $0x20] sm:$0xff]  ;;  %v2847_v6 = vld [vmem:[%s2821_s28 + $0x30] sm:$0xff] }
  0x1a   : > { %184 = vst.msk [vmem:[#allocation2 + $0xb0] sm:$0x1] %vm173_vm1, %v2697_v0  ;;  %185 = vst.msk [vmem:[#allocation2 + $0xc0] sm:$0x1] %vm173_vm1, %v2697_v0  ;;  %v2850_v7 = vld [vmem:[%s2821_s28 + $0x40] sm:$0xff]  ;;  %v2857_v8 = vld [vmem:[%s2821_s28 + $0x50] sm:$0xff] }
  0x1b   : > { %186 = vst.msk [vmem:[#allocation2 + $0xd0] sm:$0x1] %vm173_vm1, %v2697_v0  ;;  %187 = vst.msk [vmem:[#allocation2 + $0xe0] sm:$0x1] %vm173_vm1, %v2697_v0  ;;  %v2860_v9 = vld [vmem:[%s2821_s28 + $0x60] sm:$0xff]  ;;  %v2869_v10 = vld [vmem:[%s2821_s28 + $0x70] sm:$0xff] }
  0x1c   : > { %188 = vst.msk [vmem:[#allocation2 + $0xf0] sm:$0x1] %vm173_vm1, %v2697_v0  ;;  %319 = vrot.lane.b32.xlu1 %v2834_v3, %s2698_s29  ;;  %315 = vrot.lane.b32.xlu0 %v2841_v4, %s2698_s29  ;;  %v258_v11 = vld [vmem:[%s2821_s28 + $0x28] sm:$0xff]  ;;  %v2877_v12 = vld [vmem:[%s2821_s28 + $0x80] sm:$0xff]  ;;  %vm810_vm10 = vcmask 130144   ;;  %vm1004_vm11 = vcmask 162944  }
  0x1d   : > { %251 = vst.msk [vmem:[#allocation2] sm:$0xff] %vm250_vm2, %v2697_v0  ;;  %252 = vst.msk [vmem:[#allocation2 + $0x8] sm:$0xff] %vm250_vm2, %v2697_v0  ;;  %v2882_v13 = vld [vmem:[%s2821_s28 + $0x90] sm:$0xff]  ;;  %v2885_v14 = vld [vmem:[%s2821_s28 + $0xa0] sm:$0xff]  ;;  %vm1037_vm12 = vcmask 188576   ;;  %vm1214_vm13 = vcmask 195744  }
  0x1e   : > { %222 = vst.msk [vmem:[#allocation2 + $0x21] sm:$0xff] %vm169_vm0, %v2824_v1  ;;  %219 = vst.msk [vmem:[#allocation2 + $0x11] sm:$0xff] %vm169_vm0, %v2827_v2  ;;  %v2890_v15 = vld [vmem:[%s2821_s28 + $0xb0] sm:$0xff]  ;;  %v2900_v16 = vld [vmem:[%s2821_s28 + $0xc0] sm:$0xff]  ;;  %vm1252_vm14 = vcmask 221376   ;;  %vm1216_vm15 = vcmask 194720  }
  0x1f   : > { %224 = vst.msk [vmem:[#allocation2 + $0x31] sm:$0xff] %vm169_vm0, %v2844_v5  ;;  %226 = vst.msk [vmem:[#allocation2 + $0x41] sm:$0xff] %vm169_vm0, %v2847_v6  ;;  %v260_v17 = vld [vmem:[%s2821_s28 + $0x38] sm:$0xff]  ;;  %v2906_v18 = vld [vmem:[%s2821_s28 + $0xd0] sm:$0xff]  ;;  %vm1420_vm1 = vcmask 227520   ;;  %s2639_s24 = sshll.u32 %s2706_s20, 4  ;;  %s2640_s24 = int_to_ptr.vmem [resolvable:$false] %s2639_s24 }
  0x20   : > { %228 = vst.msk [vmem:[#allocation2 + $0x51] sm:$0xff] %vm169_vm0, %v2850_v7  ;;  %230 = vst.msk [vmem:[#allocation2 + $0x61] sm:$0xff] %vm169_vm0, %v2857_v8  ;;  %323 = vrot.lane.b32.xlu1 %v258_v11, %s2698_s29  ;;  %321 = vrot.lane.b32.xlu0 %v2844_v5, %s2698_s29  ;;  %v2909_v19 = vld [vmem:[%s2821_s28 + $0xe0] sm:$0xff]  ;;  %v262_v20 = vld [vmem:[%s2821_s28 + $0x48] sm:$0xff]  ;;  %s2641_s25 = scalar_lea.vmem %s2640_s24, 8192 }
  0x21   : > { %232 = vst.msk [vmem:[#allocation2 + $0x71] sm:$0xff] %vm169_vm0, %v2860_v9  ;;  %234 = vst.msk [vmem:[#allocation2 + $0x81] sm:$0xff] %vm169_vm0, %v2869_v10  ;;  %v264_v21 = vld [vmem:[%s2821_s28 + $0x58] sm:$0xff]  ;;  %v266_v22 = vld [vmem:[%s2821_s28 + $0x68] sm:$0xff] }
  0x22   : > { %236 = vst.msk [vmem:[#allocation2 + $0x91] sm:$0xff] %vm169_vm0, %v2877_v12  ;;  %238 = vst.msk [vmem:[#allocation2 + $0xa1] sm:$0xff] %vm169_vm0, %v2882_v13  ;;  %v192_v23 = vld [vmem:[%s2821_s28 + $0x18] sm:$0x7f]  ;;  %v190_v24 = vld [vmem:[%s2821_s28 + $0x8] sm:$0x7f] }
  0x23   : > { %240 = vst.msk [vmem:[#allocation2 + $0xb1] sm:$0xff] %vm169_vm0, %v2885_v14  ;;  %242 = vst.msk [vmem:[#allocation2 + $0xc1] sm:$0xff] %vm169_vm0, %v2890_v15  ;;  %v194_v25 = vld [vmem:[%s2821_s28 + $0x28] sm:$0x7f]  ;;  %v196_v26 = vld [vmem:[%s2821_s28 + $0x38] sm:$0x7f] }
  0x24   : > { %244 = vst.msk [vmem:[#allocation2 + $0xd1] sm:$0xff] %vm169_vm0, %v2900_v16  ;;  %246 = vst.msk [vmem:[#allocation2 + $0xe1] sm:$0xff] %vm169_vm0, %v2906_v18  ;;  %327 = vrot.lane.b32.xlu1 %v260_v17, %s2698_s29  ;;  %325 = vrot.lane.b32.xlu0 %v2847_v6, %s2698_s29  ;;  %v198_v27 = vld [vmem:[%s2821_s28 + $0x48] sm:$0x7f]  ;;  %v200_v28 = vld [vmem:[%s2821_s28 + $0x58] sm:$0x7f] }
  0x25   : > { %248 = vst.msk [vmem:[#allocation2 + $0xf1] sm:$0xff] %vm169_vm0, %v2909_v19  ;;  %v268_v29 = vld [vmem:[%s2821_s28 + $0x78] sm:$0xff]  ;;  %v202_v30 = vld [vmem:[%s2821_s28 + $0x68] sm:$0x7f]  ;;  %vm1249_vm0 = vcmask 228544  }
  0x26   : > { %223 = vst.msk [vmem:[#allocation2 + $0x29] sm:$0x7f] %vm220_vm3, %v192_v23  ;;  %221 = vst.msk [vmem:[#allocation2 + $0x19] sm:$0x7f] %vm220_vm3, %v190_v24  ;;  %v204_v31 = vld [vmem:[%s2821_s28 + $0x78] sm:$0x7f] }
  0x27   : > { %225 = vst.msk [vmem:[#allocation2 + $0x39] sm:$0x7f] %vm220_vm3, %v194_v25  ;;  %227 = vst.msk [vmem:[#allocation2 + $0x49] sm:$0x7f] %vm220_vm3, %v196_v26  ;;  %v206_v32 = vld [vmem:[%s2821_s28 + $0x88] sm:$0x7f] }
  0x28   : > { %331 = vrot.lane.b32.xlu1 %v262_v20, %s2698_s29  ;;  %329 = vrot.lane.b32.xlu0 %v2850_v7, %s2698_s29  ;;  %229 = vst.msk [vmem:[#allocation2 + $0x59] sm:$0x7f] %vm220_vm3, %v198_v27  ;;  %231 = vst.msk [vmem:[#allocation2 + $0x69] sm:$0x7f] %vm220_vm3, %v200_v28  ;;  %v208_v33 = vld [vmem:[%s2821_s28 + $0x98] sm:$0x7f] }
  0x29   : > { %233 = vst.msk [vmem:[#allocation2 + $0x79] sm:$0x7f] %vm220_vm3, %v202_v30  ;;  %235 = vst.msk [vmem:[#allocation2 + $0x89] sm:$0x7f] %vm220_vm3, %v204_v31  ;;  %v210_v34 = vld [vmem:[%s2821_s28 + $0xa8] sm:$0x7f] }
  0x2a   : > { %237 = vst.msk [vmem:[#allocation2 + $0x99] sm:$0x7f] %vm220_vm3, %v206_v32  ;;  %239 = vst.msk [vmem:[#allocation2 + $0xa9] sm:$0x7f] %vm220_vm3, %v208_v33  ;;  %v2959_v35 = vld [vmem:[%s2821_s28 + $0x88] sm:$0xff]  ;;  %v2968_v37 = vld [vmem:[%s2821_s28 + $0x98] sm:$0xff] }
  0x2b   : > { %241 = vst.msk [vmem:[#allocation2 + $0xb9] sm:$0x7f] %vm220_vm3, %v210_v34  ;;  %v212_v36 = vld [vmem:[%s2821_s28 + $0xb8] sm:$0x7f]  ;;  %v214_v38 = vld [vmem:[%s2821_s28 + $0xc8] sm:$0x7f] }
  0x2c   : > { %335 = vrot.lane.b32.xlu1 %v264_v21, %s2698_s29  ;;  %333 = vrot.lane.b32.xlu0 %v2857_v8, %s2698_s29  ;;  %243 = vst.msk [vmem:[#allocation2 + $0xc9] sm:$0x7f] %vm220_vm3, %v212_v36  ;;  %245 = vst.msk [vmem:[#allocation2 + $0xd9] sm:$0x7f] %vm220_vm3, %v214_v38  ;;  %v2977_v39 = vld [vmem:[%s2821_s28 + $0xa8] sm:$0xff]  ;;  %v276_v41 = vld [vmem:[%s2821_s28 + $0xb8] sm:$0xff] }
  0x2d   : > { %v216_v40 = vld [vmem:[%s2821_s28 + $0xd8] sm:$0x7f]  ;;  %v218_v42 = vld [vmem:[%s2821_s28 + $0xe8] sm:$0x7f]  ;;  %434 = vst.msk [vmem:[#allocation2] sm:$0xff] %vm433_vm4, %v2697_v0  ;;  %435 = vst.msk [vmem:[#allocation2 + $0x8] sm:$0xff] %vm433_vm4, %v2697_v0 }
  0x2e   : > { %247 = vst.msk [vmem:[#allocation2 + $0xe9] sm:$0x7f] %vm220_vm3, %v216_v40  ;;  %249 = vst.msk [vmem:[#allocation2 + $0xf9] sm:$0x7f] %vm220_vm3, %v218_v42  ;;  %v278_v43 = vld [vmem:[%s2821_s28 + $0xc8] sm:$0xff]  ;;  %v280_v44 = vld [vmem:[%s2821_s28 + $0xd8] sm:$0xff] }
  0x2f   : > { %634 = vst.msk [vmem:[#allocation2] sm:$0x1] %vm633_vm5, %v2697_v0  ;;  %v282_v45 = vld [vmem:[%s2821_s28 + $0xe8] sm:$0xff]  ;;  %v455_v48 = vld [vmem:[%s2821_s28 + $0x19] sm:$0x7f]  ;;  %v3018_v49 = vld [vmem:[%s2821_s28 + $0x11] sm:$0xff] }
  0x30   : > { %339 = vrot.lane.b32.xlu1 %v266_v22, %s2698_s29  ;;  %337 = vrot.lane.b32.xlu0 %v2860_v9, %s2698_s29  ;;  %v453_v46 = vld [vmem:[%s2821_s28 + $0x9] sm:$0x7f]  ;;  %v3011_v47 = vld [vmem:[%s2821_s28 + $0x1] sm:$0xff]  ;;  %vm1636_vm3 = vcmask 286976  }
  0x31   : > { %v457_v50 = vld [vmem:[%s2821_s28 + $0x29] sm:$0x7f]  ;;  %v3025_v51 = vld [vmem:[%s2821_s28 + $0x21] sm:$0xff]  ;;  %v459_v52 = vld [vmem:[%s2821_s28 + $0x39] sm:$0x7f] }
  0x32   : > { %v458_v53 = vld [vmem:[%s2821_s28 + $0x31] sm:$0xff]  ;;  %v461_v54 = vld [vmem:[%s2821_s28 + $0x49] sm:$0x7f]  ;;  %v460_v55 = vld [vmem:[%s2821_s28 + $0x41] sm:$0xff] }
  0x33   : > { %v463_v56 = vld [vmem:[%s2821_s28 + $0x59] sm:$0x7f]  ;;  %v462_v57 = vld [vmem:[%s2821_s28 + $0x51] sm:$0xff]  ;;  %v465_v58 = vld [vmem:[%s2821_s28 + $0x69] sm:$0x7f] }
  0x34   : > { %343 = vrot.lane.b32.xlu1 %v268_v29, %s2698_s29  ;;  %341 = vrot.lane.b32.xlu0 %v2869_v10, %s2698_s29  ;;  %v464_v59 = vld [vmem:[%s2821_s28 + $0x61] sm:$0xff]  ;;  %v467_v60 = vld [vmem:[%s2821_s28 + $0x79] sm:$0x7f] }
  0x35   : > { %v466_v61 = vld [vmem:[%s2821_s28 + $0x71] sm:$0xff]  ;;  %v469_v62 = vld [vmem:[%s2821_s28 + $0x89] sm:$0x7f]  ;;  %v3052_v63 = vld [vmem:[%s2821_s28 + $0x81] sm:$0xff] }
  0x36   : > { %v471_v11 = vld [vmem:[%s2821_s28 + $0x99] sm:$0x7f]  ;;  %v3059_v17 = vld [vmem:[%s2821_s28 + $0x91] sm:$0xff]  ;;  %v473_v20 = vld [vmem:[%s2821_s28 + $0xa9] sm:$0x7f] }
  0x37   : > { %v3066_v21 = vld [vmem:[%s2821_s28 + $0xa1] sm:$0xff]  ;;  %v475_v22 = vld [vmem:[%s2821_s28 + $0xb9] sm:$0x7f]  ;;  %v474_v23 = vld [vmem:[%s2821_s28 + $0xb1] sm:$0xff] }
  0x38   : > { %347 = vrot.lane.b32.xlu1 %v2959_v35, %s2698_s29  ;;  %345 = vrot.lane.b32.xlu0 %v2877_v12, %s2698_s29  ;;  %v477_v24 = vld [vmem:[%s2821_s28 + $0xc9] sm:$0x7f]  ;;  %v476_v25 = vld [vmem:[%s2821_s28 + $0xc1] sm:$0xff] }
  0x39   : > { %v479_v26 = vld [vmem:[%s2821_s28 + $0xd9] sm:$0x7f]  ;;  %v478_v27 = vld [vmem:[%s2821_s28 + $0xd1] sm:$0xff]  ;;  %v481_v28 = vld [vmem:[%s2821_s28 + $0xe9] sm:$0x7f] }
  0x3a   : > { %v480_v29 = vld [vmem:[%s2821_s28 + $0xe1] sm:$0xff]  ;;  %v653_v36 = vld [vmem:[%s2821_s28 + $0x18] sm:$0x7f] }
  0x3b   : > { %v651_v32 = vld [vmem:[%s2821_s28 + $0x8] sm:$0x7f] }
  0x3c   : > { %351 = vrot.lane.b32.xlu1 %v2968_v37, %s2698_s29  ;;  %349 = vrot.lane.b32.xlu0 %v2882_v13, %s2698_s29 }
  0x40   : > { %355 = vrot.lane.b32.xlu1 %v2977_v39, %s2698_s29  ;;  %353 = vrot.lane.b32.xlu0 %v2885_v14, %s2698_s29 }
  0x44   : > { %359 = vrot.lane.b32.xlu1 %v276_v41, %s2698_s29  ;;  %357 = vrot.lane.b32.xlu0 %v2890_v15, %s2698_s29  ;;  %v655_v41 = vld [vmem:[%s2821_s28 + $0x28] sm:$0x7f] }
  0x48   : > { %363 = vrot.lane.b32.xlu1 %v278_v43, %s2698_s29  ;;  %361 = vrot.lane.b32.xlu0 %v2900_v16, %s2698_s29 }
  0x4c   : > { %367 = vrot.lane.b32.xlu1 %v280_v44, %s2698_s29  ;;  %365 = vrot.lane.b32.xlu0 %v2906_v18, %s2698_s29  ;;  %v657_v44 = vld [vmem:[%s2821_s28 + $0x38] sm:$0x7f] }
  0x50   : > { %371 = vrot.lane.b32.xlu1 %v282_v45, %s2698_s29  ;;  %369 = vrot.lane.b32.xlu0 %v2909_v19, %s2698_s29 }
  0x54   : > { %514 = vrot.lane.b32.xlu1 %v453_v46, %s2699_s30  ;;  %512 = vrot.lane.b32.xlu0 %v3011_v47, %s2699_s30 }
  0x58   : > { %518 = vrot.lane.b32.xlu1 %v455_v48, %s2699_s30  ;;  %516 = vrot.lane.b32.xlu0 %v3018_v49, %s2699_s30  ;;  %v659_v48 = vld [vmem:[%s2821_s28 + $0x48] sm:$0x7f] }
  0x5c   : > { %522 = vrot.lane.b32.xlu1 %v457_v50, %s2699_s30  ;;  %520 = vrot.lane.b32.xlu0 %v3025_v51, %s2699_s30 }
  0x60   : > { %526 = vrot.lane.b32.xlu1 %v459_v52, %s2699_s30  ;;  %524 = vrot.lane.b32.xlu0 %v458_v53, %s2699_s30  ;;  %v661_v53 = vld [vmem:[%s2821_s28 + $0x58] sm:$0x7f] }
  0x64   : > { %530 = vrot.lane.b32.xlu1 %v461_v54, %s2699_s30  ;;  %528 = vrot.lane.b32.xlu0 %v460_v55, %s2699_s30  ;;  %v663_v55 = vld [vmem:[%s2821_s28 + $0x68] sm:$0x7f] }
  0x68   : > { %534 = vrot.lane.b32.xlu1 %v463_v56, %s2699_s30  ;;  %532 = vrot.lane.b32.xlu0 %v462_v57, %s2699_s30  ;;  %v665_v57 = vld [vmem:[%s2821_s28 + $0x78] sm:$0x7f] }
  0x6c   : > { %538 = vrot.lane.b32.xlu1 %v465_v58, %s2699_s30  ;;  %536 = vrot.lane.b32.xlu0 %v464_v59, %s2699_s30  ;;  %v667_v59 = vld [vmem:[%s2821_s28 + $0x88] sm:$0x7f] }
  0x70   : > { %542 = vrot.lane.b32.xlu1 %v467_v60, %s2699_s30  ;;  %540 = vrot.lane.b32.xlu0 %v466_v61, %s2699_s30  ;;  %v669_v61 = vld [vmem:[%s2821_s28 + $0x98] sm:$0x7f] }
  0x74   : > { %546 = vrot.lane.b32.xlu1 %v469_v62, %s2699_s30  ;;  %544 = vrot.lane.b32.xlu0 %v3052_v63, %s2699_s30 }
  0x78   : > { %550 = vrot.lane.b32.xlu1 %v471_v11, %s2699_s30  ;;  %548 = vrot.lane.b32.xlu0 %v3059_v17, %s2699_s30  ;;  %v671_v11 = vld [vmem:[%s2821_s28 + $0xa8] sm:$0x7f] }
  0x7c   : > { %554 = vrot.lane.b32.xlu1 %v473_v20, %s2699_s30  ;;  %552 = vrot.lane.b32.xlu0 %v3066_v21, %s2699_s30 }
  0x80   : > { %558 = vrot.lane.b32.xlu1 %v475_v22, %s2699_s30  ;;  %556 = vrot.lane.b32.xlu0 %v474_v23, %s2699_s30  ;;  %v673_v23 = vld [vmem:[%s2821_s28 + $0xb8] sm:$0x7f] }
  0x84   : > { %562 = vrot.lane.b32.xlu1 %v477_v24, %s2699_s30  ;;  %560 = vrot.lane.b32.xlu0 %v476_v25, %s2699_s30 }
  0x88   : > { %566 = vrot.lane.b32.xlu1 %v479_v26, %s2699_s30  ;;  %564 = vrot.lane.b32.xlu0 %v478_v27, %s2699_s30  ;;  %v675_v26 = vld [vmem:[%s2821_s28 + $0xc8] sm:$0x7f] }
  0x8a   : > { %v318_v30 = vpop.permute.xlu1 %317  ;;  %v314_v31 = vpop.permute.xlu0 %313 }
  0x8b   : > { %405 = vst.msk [vmem:[#allocation2 + $0x20] sm:$0xff] %vm250_vm2, %v318_v30  ;;  %403 = vst.msk [vmem:[#allocation2 + $0x10] sm:$0xff] %vm250_vm2, %v314_v31  ;;  %v679_v31 = vld [vmem:[%s2821_s28 + $0xe8] sm:$0x7f] }
  0x8c   : > { %570 = vrot.lane.b32.xlu1 %v481_v28, %s2699_s30  ;;  %568 = vrot.lane.b32.xlu0 %v480_v29, %s2699_s30  ;;  %v677_v29 = vld [vmem:[%s2821_s28 + $0xd8] sm:$0x7f] }
  0x8e   : > { %v320_v33 = vpop.permute.xlu1 %319  ;;  %v316_v34 = vpop.permute.xlu0 %315 }
  0x8f   : > { %406 = vst.msk [vmem:[#allocation2 + $0x28] sm:$0xff] %vm250_vm2, %v320_v33  ;;  %404 = vst.msk [vmem:[#allocation2 + $0x18] sm:$0xff] %vm250_vm2, %v316_v34  ;;  %v681_v33 = vld [vmem:[%s2821_s28 + $0xf8] sm:$0x7f]  ;;  %v680_v34 = vld [vmem:[%s2821_s28 + $0xf0] sm:$0xff] }
  0x90   : > { %438 = vst.msk [vmem:[#allocation2 + $0x2f] sm:$0x1] %vm436_vm6, %v2697_v0  ;;  %437 = vst.msk [vmem:[#allocation2 + $0x1f] sm:$0x1] %vm436_vm6, %v2697_v0  ;;  %716 = vrot.lane.b32.xlu1 %v651_v32, %s2700_s4  ;;  %714 = vrot.lane.b32.xlu0 %v2827_v2, %s2700_s4 }
  0x92   : > { %v324_v38 = vpop.permute.xlu1 %323  ;;  %v322_v40 = vpop.permute.xlu0 %321 }
  0x93   : > { %408 = vst.msk [vmem:[#allocation2 + $0x38] sm:$0xff] %vm250_vm2, %v324_v38  ;;  %407 = vst.msk [vmem:[#allocation2 + $0x30] sm:$0xff] %vm250_vm2, %v322_v40 }
  0x94   : > { %439 = vst.msk [vmem:[#allocation2 + $0x3f] sm:$0x1] %vm436_vm6, %v2697_v0  ;;  %720 = vrot.lane.b32.xlu1 %v653_v36, %s2700_s4  ;;  %718 = vrot.lane.b32.xlu0 %v2824_v1, %s2700_s4 }
  0x96   : > { %v328_v42 = vpop.permute.xlu1 %327  ;;  %v326_v43 = vpop.permute.xlu0 %325 }
  0x97   : > { %410 = vst.msk [vmem:[#allocation2 + $0x48] sm:$0xff] %vm250_vm2, %v328_v42  ;;  %409 = vst.msk [vmem:[#allocation2 + $0x40] sm:$0xff] %vm250_vm2, %v326_v43 }
  0x98   : > { %440 = vst.msk [vmem:[#allocation2 + $0x4f] sm:$0x1] %vm436_vm6, %v2697_v0  ;;  %724 = vrot.lane.b32.xlu1 %v655_v41, %s2700_s4  ;;  %722 = vrot.lane.b32.xlu0 %v2844_v5, %s2700_s4 }
  0x9a   : > { %v332_v45 = vpop.permute.xlu1 %331  ;;  %v330_v46 = vpop.permute.xlu0 %329 }
  0x9b   : > { %412 = vst.msk [vmem:[#allocation2 + $0x58] sm:$0xff] %vm250_vm2, %v332_v45  ;;  %411 = vst.msk [vmem:[#allocation2 + $0x50] sm:$0xff] %vm250_vm2, %v330_v46 }
  0x9c   : > { %441 = vst.msk [vmem:[#allocation2 + $0x5f] sm:$0x1] %vm436_vm6, %v2697_v0  ;;  %728 = vrot.lane.b32.xlu1 %v657_v44, %s2700_s4  ;;  %726 = vrot.lane.b32.xlu0 %v2847_v6, %s2700_s4 }
  0x9e   : > { %v336_v50 = vpop.permute.xlu1 %335  ;;  %v334_v52 = vpop.permute.xlu0 %333 }
  0x9f   : > { %414 = vst.msk [vmem:[#allocation2 + $0x68] sm:$0xff] %vm250_vm2, %v336_v50  ;;  %413 = vst.msk [vmem:[#allocation2 + $0x60] sm:$0xff] %vm250_vm2, %v334_v52  ;;  %v2367_v52 = vld [vmem:[%s2821_s28 + $0x98] sm:$0x7f] }
  0xa0   : > { %442 = vst.msk [vmem:[#allocation2 + $0x6f] sm:$0x1] %vm436_vm6, %v2697_v0  ;;  %732 = vrot.lane.b32.xlu1 %v659_v48, %s2700_s4  ;;  %730 = vrot.lane.b32.xlu0 %v2850_v7, %s2700_s4 }
  0xa2   : > { %v340_v54 = vpop.permute.xlu1 %339  ;;  %v338_v6 = vpop.permute.xlu0 %337 }
  0xa3   : > { %416 = vst.msk [vmem:[#allocation2 + $0x78] sm:$0xff] %vm250_vm2, %v340_v54  ;;  %415 = vst.msk [vmem:[#allocation2 + $0x70] sm:$0xff] %vm250_vm2, %v338_v6 }
  0xa4   : > { %443 = vst.msk [vmem:[#allocation2 + $0x7f] sm:$0x1] %vm436_vm6, %v2697_v0  ;;  %736 = vrot.lane.b32.xlu1 %v661_v53, %s2700_s4  ;;  %734 = vrot.lane.b32.xlu0 %v2857_v8, %s2700_s4 }
  0xa6   : > { %v344_v56 = vpop.permute.xlu1 %343  ;;  %v342_v7 = vpop.permute.xlu0 %341 }
  0xa7   : > { %418 = vst.msk [vmem:[#allocation2 + $0x88] sm:$0xff] %vm250_vm2, %v344_v56  ;;  %417 = vst.msk [vmem:[#allocation2 + $0x80] sm:$0xff] %vm250_vm2, %v342_v7 }
  0xa8   : > { %444 = vst.msk [vmem:[#allocation2 + $0x8f] sm:$0x1] %vm436_vm6, %v2697_v0  ;;  %740 = vrot.lane.b32.xlu1 %v663_v55, %s2700_s4  ;;  %738 = vrot.lane.b32.xlu0 %v2860_v9, %s2700_s4 }
  0xaa   : > { %v348_v58 = vpop.permute.xlu1 %347  ;;  %v346_v8 = vpop.permute.xlu0 %345 }
  0xab   : > { %420 = vst.msk [vmem:[#allocation2 + $0x98] sm:$0xff] %vm250_vm2, %v348_v58  ;;  %419 = vst.msk [vmem:[#allocation2 + $0x90] sm:$0xff] %vm250_vm2, %v346_v8  ;;  %v1868_v58 = vld [vmem:[%s4001_s1 + $0x18] sm:$0xff] }
  0xac   : > { %445 = vst.msk [vmem:[#allocation2 + $0x9f] sm:$0x1] %vm436_vm6, %v2697_v0  ;;  %744 = vrot.lane.b32.xlu1 %v665_v57, %s2700_s4  ;;  %742 = vrot.lane.b32.xlu0 %v2869_v10, %s2700_s4 }
  0xae   : > { %v352_v60 = vpop.permute.xlu1 %351  ;;  %v350_v9 = vpop.permute.xlu0 %349 }
  0xaf   : > { %422 = vst.msk [vmem:[#allocation2 + $0xa8] sm:$0xff] %vm250_vm2, %v352_v60  ;;  %421 = vst.msk [vmem:[#allocation2 + $0xa0] sm:$0xff] %vm250_vm2, %v350_v9  ;;  %v1866_v60 = vld [vmem:[%s4001_s1 + $0x8] sm:$0xff]  ;;  %v1057_v9 = vld [vmem:[%s2821_s28 + $0x19] sm:$0x7f] }
  0xb0   : > { %446 = vst.msk [vmem:[#allocation2 + $0xaf] sm:$0x1] %vm436_vm6, %v2697_v0  ;;  %748 = vrot.lane.b32.xlu1 %v667_v59, %s2700_s4  ;;  %746 = vrot.lane.b32.xlu0 %v2877_v12, %s2700_s4 }
  0xb2   : > { %v356_v62 = vpop.permute.xlu1 %355  ;;  %v354_v10 = vpop.permute.xlu0 %353 }
  0xb3   : > { %424 = vst.msk [vmem:[#allocation2 + $0xb8] sm:$0xff] %vm250_vm2, %v356_v62  ;;  %423 = vst.msk [vmem:[#allocation2 + $0xb0] sm:$0xff] %vm250_vm2, %v354_v10  ;;  %v1073_v10 = vld [vmem:[%s2821_s28 + $0x99] sm:$0x7f] }
  0xb4   : > { %447 = vst.msk [vmem:[#allocation2 + $0xbf] sm:$0x1] %vm436_vm6, %v2697_v0  ;;  %752 = vrot.lane.b32.xlu1 %v669_v61, %s2700_s4  ;;  %750 = vrot.lane.b32.xlu0 %v2882_v13, %s2700_s4 }
  0xb6   : > { %v360_v20 = vpop.permute.xlu1 %359  ;;  %v358_v22 = vpop.permute.xlu0 %357 }
  0xb7   : > { %426 = vst.msk [vmem:[#allocation2 + $0xc8] sm:$0xff] %vm250_vm2, %v360_v20  ;;  %425 = vst.msk [vmem:[#allocation2 + $0xc0] sm:$0xff] %vm250_vm2, %v358_v22 }
  0xb8   : > { %448 = vst.msk [vmem:[#allocation2 + $0xcf] sm:$0x1] %vm436_vm6, %v2697_v0  ;;  %756 = vrot.lane.b32.xlu1 %v671_v11, %s2700_s4  ;;  %754 = vrot.lane.b32.xlu0 %v2885_v14, %s2700_s4 }
  0xba   : > { %v364_v24 = vpop.permute.xlu1 %363  ;;  %v362_v25 = vpop.permute.xlu0 %361 }
  0xbb   : > { %428 = vst.msk [vmem:[#allocation2 + $0xd8] sm:$0xff] %vm250_vm2, %v364_v24  ;;  %427 = vst.msk [vmem:[#allocation2 + $0xd0] sm:$0xff] %vm250_vm2, %v362_v25  ;;  %v2353_v24 = vld [vmem:[%s2821_s28 + $0x28] sm:$0x7f] }
  0xbc   : > { %449 = vst.msk [vmem:[#allocation2 + $0xdf] sm:$0x1] %vm436_vm6, %v2697_v0  ;;  %760 = vrot.lane.b32.xlu1 %v673_v23, %s2700_s4  ;;  %758 = vrot.lane.b32.xlu0 %v2890_v15, %s2700_s4 }
  0xbe   : > { %v368_v27 = vpop.permute.xlu1 %367  ;;  %v366_v28 = vpop.permute.xlu0 %365 }
  0xbf   : > { %430 = vst.msk [vmem:[#allocation2 + $0xe8] sm:$0xff] %vm250_vm2, %v368_v27  ;;  %429 = vst.msk [vmem:[#allocation2 + $0xe0] sm:$0xff] %vm250_vm2, %v366_v28  ;;  %v2369_v27 = vld [vmem:[%s2821_s28 + $0xa8] sm:$0x7f] }
  0xc0   : > { %450 = vst.msk [vmem:[#allocation2 + $0xef] sm:$0x1] %vm436_vm6, %v2697_v0  ;;  %764 = vrot.lane.b32.xlu1 %v675_v26, %s2700_s4  ;;  %762 = vrot.lane.b32.xlu0 %v2900_v16, %s2700_s4 }
  0xc2   : > { %v372_v30 = vpop.permute.xlu1 %371  ;;  %v370_v15 = vpop.permute.xlu0 %369 }
  0xc3   : > { %432 = vst.msk [vmem:[#allocation2 + $0xf8] sm:$0xff] %vm250_vm2, %v372_v30  ;;  %431 = vst.msk [vmem:[#allocation2 + $0xf0] sm:$0xff] %vm250_vm2, %v370_v15  ;;  %v849_v30 = vld [vmem:[%s2821_s28 + $0x28] sm:$0xff]  ;;  %vm1450_vm2 = vcmask 261344  }
  0xc4   : > { %451 = vst.msk [vmem:[#allocation2 + $0xff] sm:$0x1] %vm436_vm6, %v2697_v0  ;;  %768 = vrot.lane.b32.xlu1 %v677_v29, %s2700_s4  ;;  %766 = vrot.lane.b32.xlu0 %v2906_v18, %s2700_s4  ;;  %vm1803_vm6 = vcmask 293120  }
  0xc6   : > { %v515_v16 = vpop.permute.xlu1 %514  ;;  %v513_v32 = vpop.permute.xlu0 %512 }
  0xc7   : > { %604 = vst.msk [vmem:[#allocation2 + $0x18] sm:$0x7f] %vm603_vm7, %v515_v16 }
  0xc8   : > { %602 = vst.msk [vmem:[#allocation2 + $0x10] sm:$0xff] %vm433_vm4, %v513_v32  ;;  %772 = vrot.lane.b32.xlu1 %v679_v31, %s2700_s4  ;;  %770 = vrot.lane.b32.xlu0 %v2909_v19, %s2700_s4 }
  0xc9   : > { %635 = vst.msk [vmem:[#allocation2 + $0x10] sm:$0x1] %vm633_vm5, %v2697_v0 }
  0xca   : > { %v519_v36 = vpop.permute.xlu1 %518  ;;  %v517_v18 = vpop.permute.xlu0 %516 }
  0xcb   : > { %606 = vst.msk [vmem:[#allocation2 + $0x28] sm:$0x7f] %vm603_vm7, %v519_v36 }
  0xcc   : > { %605 = vst.msk [vmem:[#allocation2 + $0x20] sm:$0xff] %vm433_vm4, %v517_v18  ;;  %776 = vrot.lane.b32.xlu1 %v681_v33, %s2700_s4  ;;  %774 = vrot.lane.b32.xlu0 %v680_v34, %s2700_s4 }
  0xcd   : > { %636 = vst.msk [vmem:[#allocation2 + $0x20] sm:$0x1] %vm633_vm5, %v2697_v0 }
  0xce   : > { %v523_v38 = vpop.permute.xlu1 %522  ;;  %v521_v40 = vpop.permute.xlu0 %520 }
  0xcf   : > { %608 = vst.msk [vmem:[#allocation2 + $0x38] sm:$0x7f] %vm603_vm7, %v523_v38 }
  0xd0   : > { %607 = vst.msk [vmem:[#allocation2 + $0x30] sm:$0xff] %vm433_vm4, %v521_v40  ;;  %910 = vrot.lane.b32.xlu1 %v2841_v4, %s2701_s5  ;;  %908 = vrot.lane.b32.xlu0 %v2827_v2, %s2701_s5 }
  0xd1   : > { %637 = vst.msk [vmem:[#allocation2 + $0x30] sm:$0x1] %vm633_vm5, %v2697_v0 }
  0xd2   : > { %v527_v19 = vpop.permute.xlu1 %526  ;;  %v525_v41 = vpop.permute.xlu0 %524 }
  0xd3   : > { %610 = vst.msk [vmem:[#allocation2 + $0x48] sm:$0x7f] %vm603_vm7, %v527_v19 }
  0xd4   : > { %609 = vst.msk [vmem:[#allocation2 + $0x40] sm:$0xff] %vm433_vm4, %v525_v41  ;;  %914 = vrot.lane.b32.xlu1 %v2834_v3, %s2701_s5  ;;  %912 = vrot.lane.b32.xlu0 %v2824_v1, %s2701_s5  ;;  %v2429_v41 = vld [vmem:[%s2821_s28 + $0xa9] sm:$0x7f] }
  0xd5   : > { %638 = vst.msk [vmem:[#allocation2 + $0x40] sm:$0x1] %vm633_vm5, %v2697_v0 }
  0xd6   : > { %v531_v4 = vpop.permute.xlu1 %530  ;;  %v529_v42 = vpop.permute.xlu0 %528 }
  0xd7   : > { %612 = vst.msk [vmem:[#allocation2 + $0x58] sm:$0x7f] %vm603_vm7, %v531_v4  ;;  %v2413_v4 = vld [vmem:[%s2821_s28 + $0x29] sm:$0x7f] }
  0xd8   : > { %611 = vst.msk [vmem:[#allocation2 + $0x50] sm:$0xff] %vm433_vm4, %v529_v42  ;;  %940 = vrot.lane.b32.xlu1 %v2877_v12, %s2701_s5  ;;  %916 = vrot.lane.b32.xlu0 %v2844_v5, %s2701_s5  ;;  %v1055_v12 = vld [vmem:[%s2821_s28 + $0x9] sm:$0x7f] }
  0xd9   : > { %639 = vst.msk [vmem:[#allocation2 + $0x50] sm:$0x1] %vm633_vm5, %v2697_v0 }
  0xda   : > { %v535_v2 = vpop.permute.xlu1 %534  ;;  %v533_v43 = vpop.permute.xlu0 %532 }
  0xdb   : > { %614 = vst.msk [vmem:[#allocation2 + $0x68] sm:$0x7f] %vm603_vm7, %v535_v2  ;;  %v2370_v2 = vld [vmem:[%s2821_s28 + $0xb0] sm:$0xff] }
  0xdc   : > { %613 = vst.msk [vmem:[#allocation2 + $0x60] sm:$0xff] %vm433_vm4, %v533_v43  ;;  %1118 = vrot.lane.b32.xlu1 %v3011_v47, %s2702_s6  ;;  %942 = vrot.lane.b32.xlu0 %v2959_v35, %s2701_s5  ;;  %v1071_v47 = vld [vmem:[%s2821_s28 + $0x89] sm:$0x7f]  ;;  %v2354_v43 = vld [vmem:[%s2821_s28 + $0x30] sm:$0xff] }
  0xdd   : > { %640 = vst.msk [vmem:[#allocation2 + $0x60] sm:$0x1] %vm633_vm5, %v2697_v0 }
  0xde   : > { %v539_v44 = vpop.permute.xlu1 %538  ;;  %v537_v45 = vpop.permute.xlu0 %536 }
  0xdf   : > { %616 = vst.msk [vmem:[#allocation2 + $0x78] sm:$0x7f] %vm603_vm7, %v539_v44 }
  0xe0   : > { %615 = vst.msk [vmem:[#allocation2 + $0x70] sm:$0xff] %vm433_vm4, %v537_v45  ;;  %1150 = vrot.lane.b32.xlu1 %v3052_v63, %s2702_s6  ;;  %1120 = vrot.lane.b32.xlu0 %v1055_v12, %s2702_s6  ;;  %v2351_v63 = vld [vmem:[%s2821_s28 + $0x18] sm:$0x7f] }
  0xe1   : > { %641 = vst.msk [vmem:[#allocation2 + $0x70] sm:$0x1] %vm633_vm5, %v2697_v0  ;;  %v2355_v45 = vld [vmem:[%s2821_s28 + $0x38] sm:$0x7f] }
  0xe2   : > { %v543_v46 = vpop.permute.xlu1 %542  ;;  %v541_v35 = vpop.permute.xlu0 %540 }
  0xe3   : > { %618 = vst.msk [vmem:[#allocation2 + $0x88] sm:$0x7f] %vm603_vm7, %v543_v46 }
  0xe4   : > { %617 = vst.msk [vmem:[#allocation2 + $0x80] sm:$0xff] %vm433_vm4, %v541_v35  ;;  %1329 = vrot.lane.b32.xlu1 %v2824_v1, %s2703_s7  ;;  %1152 = vrot.lane.b32.xlu0 %v1071_v47, %s2702_s6 }
  0xe5   : > { %642 = vst.msk [vmem:[#allocation2 + $0x80] sm:$0x1] %vm633_vm5, %v2697_v0 }
  0xe6   : > { %v547_v48 = vpop.permute.xlu1 %546  ;;  %v545_v50 = vpop.permute.xlu0 %544 }
  0xe7   : > { %620 = vst.msk [vmem:[#allocation2 + $0x98] sm:$0x7f] %vm603_vm7, %v547_v48  ;;  %v851_v48 = vld [vmem:[%s2821_s28 + $0x38] sm:$0xff] }
  0xe8   : > { %619 = vst.msk [vmem:[#allocation2 + $0x90] sm:$0xff] %vm433_vm4, %v545_v50  ;;  %1331 = vrot.lane.b32.xlu1 %v2351_v63, %s2703_s7  ;;  %1361 = vrot.lane.b32.xlu0 %v2882_v13, %s2703_s7 }
  0xe9   : > { %643 = vst.msk [vmem:[#allocation2 + $0x90] sm:$0x1] %vm633_vm5, %v2697_v0 }
  0xea   : > { %v551_v53 = vpop.permute.xlu1 %550  ;;  %v549_v54 = vpop.permute.xlu0 %548 }
  0xeb   : > { %622 = vst.msk [vmem:[#allocation2 + $0xa8] sm:$0x7f] %vm603_vm7, %v551_v53  ;;  %v867_v53 = vld [vmem:[%s2821_s28 + $0xb8] sm:$0xff] }
  0xec   : > { %621 = vst.msk [vmem:[#allocation2 + $0xa0] sm:$0xff] %vm433_vm4, %v549_v54  ;;  %1513 = vrot.lane.b32.xlu1 %v2824_v1, %s2704_s8  ;;  %1363 = vrot.lane.b32.xlu0 %v2367_v52, %s2703_s7  ;;  %v1869_v1 = vld [vmem:[%s4001_s1 + $0x20] sm:$0xf] }
  0xed   : > { %644 = vst.msk [vmem:[#allocation2 + $0xa0] sm:$0x1] %vm633_vm5, %v2697_v0  ;;  %2518 = vmatprep.subr.msk.mxu0 %vm1974_vm8, %v1869_v1  ;;  %2576 = vmatprep.subr.msk.mxu1 %vm1974_vm8, %v1869_v1 }
  0xee   : > { %v555_v6 = vpop.permute.xlu1 %554  ;;  %v553_v55 = vpop.permute.xlu0 %552  ;;  %2519 = vmatpush3.msk.msra.mxu0 %vm1974_vm8, %v1869_v1  ;;  %2581 = vmatpush3.msk.msra.mxu1 %vm1974_vm8, %v1869_v1  ;;  %v2414_v1 = vld [vmem:[%s2821_s28 + $0x31] sm:$0xff] }
  0xef   : > { %624 = vst.msk [vmem:[#allocation2 + $0xb8] sm:$0x7f] %vm603_vm7, %v555_v6  ;;  %2520 = vmatprep.subr.mxu0 %v1868_v58  ;;  %2577 = vmatprep.subr.mxu1 %v1868_v58 }
  0xf0   : > { %623 = vst.msk [vmem:[#allocation2 + $0xb0] sm:$0xff] %vm433_vm4, %v553_v55  ;;  %944 = vrot.lane.b32.xlu1 %v2882_v13, %s2701_s5  ;;  %1545 = vrot.lane.b32.xlu0 %v2882_v13, %s2704_s8 }
  0xf1   : > { %645 = vst.msk [vmem:[#allocation2 + $0xb0] sm:$0x1] %vm633_vm5, %v2697_v0  ;;  %2521 = vmatpush3.msra.mxu0 %v1868_v58  ;;  %2582 = vmatpush3.msra.mxu1 %v1868_v58  ;;  %v1061_v58 = vld [vmem:[%s2821_s28 + $0x39] sm:$0x7f] }
  0xf2   : > { %v559_v56 = vpop.permute.xlu1 %558  ;;  %v557_v7 = vpop.permute.xlu0 %556 }
  0xf3   : > { %626 = vst.msk [vmem:[#allocation2 + $0xc8] sm:$0x7f] %vm603_vm7, %v559_v56 }
  0xf4   : > { %625 = vst.msk [vmem:[#allocation2 + $0xc0] sm:$0xff] %vm433_vm4, %v557_v7  ;;  %1515 = vrot.lane.b32.xlu1 %v2834_v3, %s2704_s8  ;;  %946 = vrot.lane.b32.xlu0 %v2968_v37, %s2701_s5  ;;  %v1867_v3 = vld [vmem:[%s4001_s1 + $0x10] sm:$0xff] }
  0xf5   : > { %646 = vst.msk [vmem:[#allocation2 + $0xc0] sm:$0x1] %vm633_vm5, %v2697_v0  ;;  %2522 = vmatprep.subr.mxu0 %v1867_v3  ;;  %2578 = vmatprep.subr.mxu1 %v1867_v3  ;;  %v2430_v7 = vld [vmem:[%s2821_s28 + $0xb1] sm:$0xff] }
  0xf6   : > { %v563_v13 = vpop.permute.xlu1 %562  ;;  %v561_v57 = vpop.permute.xlu0 %560  ;;  %2523 = vmatpush3.msra.mxu0 %v1867_v3  ;;  %2583 = vmatpush3.msra.mxu1 %v1867_v3 }
  0xf7   : > { %628 = vst.msk [vmem:[#allocation2 + $0xd8] sm:$0x7f] %vm603_vm7, %v563_v13  ;;  %2524 = vmatprep.subr.mxu0 %v1866_v60  ;;  %2579 = vmatprep.subr.mxu1 %v1866_v60 }
  0xf8   : > { %627 = vst.msk [vmem:[#allocation2 + $0xd0] sm:$0xff] %vm433_vm4, %v561_v57  ;;  %1712 = vrot.lane.b32.xlu1 %v3018_v49, %s2705_s19  ;;  %1547 = vrot.lane.b32.xlu0 %v2968_v37, %s2704_s8  ;;  %v1865_v37 = vld [vmem:[%s4001_s1] sm:$0xff] }
  0xf9   : > { %647 = vst.msk [vmem:[#allocation2 + $0xd0] sm:$0x1] %vm633_vm5, %v2697_v0  ;;  %2525 = vmatpush3.msra.mxu0 %v1866_v60  ;;  %2584 = vmatpush3.msra.mxu1 %v1866_v60 }
  0xfa   : > { %v567_v8 = vpop.permute.xlu1 %566  ;;  %v565_v59 = vpop.permute.xlu0 %564  ;;  %2526 = vmatprep.subr.mxu0 %v1865_v37  ;;  %2580 = vmatprep.subr.mxu1 %v1865_v37 }
  0xfb   : > { %630 = vst.msk [vmem:[#allocation2 + $0xe8] sm:$0x7f] %vm603_vm7, %v567_v8  ;;  %2527 = vmatpush3.msra.mxu0 %v1865_v37  ;;  %2585 = vmatpush3.msra.mxu1 %v1865_v37 }
  0xfc   : > { %629 = vst.msk [vmem:[#allocation2 + $0xe0] sm:$0xff] %vm433_vm4, %v565_v59  ;;  %1122 = vrot.lane.b32.xlu1 %v3018_v49, %s2702_s6  ;;  %1744 = vrot.lane.b32.xlu0 %v3059_v17, %s2705_s19  ;;  %v2411_v49 = vld [vmem:[%s2821_s28 + $0x19] sm:$0x7f] }
  0xfd   : > { %648 = vst.msk [vmem:[#allocation2 + $0xe0] sm:$0x1] %vm633_vm5, %v2697_v0  ;;  %v1077_v59 = vld [vmem:[%s2821_s28 + $0xb9] sm:$0x7f] }
  0xfe   : > { %v571_v61 = vpop.permute.xlu1 %570  ;;  %v569_v62 = vpop.permute.xlu0 %568 }
  0xff   : > { %632 = vst.msk [vmem:[#allocation2 + $0xf8] sm:$0x7f] %vm603_vm7, %v571_v61  ;;  %v2415_v61 = vld [vmem:[%s2821_s28 + $0x39] sm:$0x7f] }
 0x100   : > { %631 = vst.msk [vmem:[#allocation2 + $0xf0] sm:$0xff] %vm433_vm4, %v569_v62  ;;  %1154 = vrot.lane.b32.xlu1 %v3059_v17, %s2702_s6  ;;  %1124 = vrot.lane.b32.xlu0 %v1057_v9, %s2702_s6  ;;  %v2427_v17 = vld [vmem:[%s2821_s28 + $0x99] sm:$0x7f]  ;;  %vm1633_vm4 = vcmask 294144  }
 0x101   : > { %649 = vst.msk [vmem:[#allocation2 + $0xf0] sm:$0x1] %vm633_vm5, %v2697_v0  ;;  %v2431_v9 = vld [vmem:[%s2821_s28 + $0xb9] sm:$0x7f]  ;;  %vm1877_vm5 = vcmask 293888  }
 0x102   : > { %v717_v11 = vpop.permute.xlu1 %716  ;;  %v715_v20 = vpop.permute.xlu0 %714 }
 0x103   : > { %813 = vst.msk [vmem:[#allocation2 + $0x9] sm:$0x7f] %vm812_vm9, %v717_v11  ;;  %v2356_v11 = vld [vmem:[%s2821_s28 + $0x40] sm:$0xff] }
 0x104   : > { %811 = vst.msk [vmem:[#allocation2 + $0x1] sm:$0xff] %vm810_vm10, %v715_v20  ;;  %1714 = vrot.lane.b32.xlu1 %v2411_v49, %s2705_s19  ;;  %1156 = vrot.lane.b32.xlu0 %v1073_v10, %s2702_s6  ;;  %v2372_v10 = vld [vmem:[%s2821_s28 + $0xc0] sm:$0xff] }
 0x106   : > { %v721_v22 = vpop.permute.xlu1 %720  ;;  %v719_v23 = vpop.permute.xlu0 %718 }
 0x107   : > { %815 = vst.msk [vmem:[#allocation2 + $0x19] sm:$0x7f] %vm812_vm9, %v721_v22  ;;  %v2373_v22 = vld [vmem:[%s2821_s28 + $0xc8] sm:$0x7f] }
 0x108   : > { %814 = vst.msk [vmem:[#allocation2 + $0x11] sm:$0xff] %vm810_vm10, %v719_v23  ;;  %1333 = vrot.lane.b32.xlu1 %v2844_v5, %s2703_s7  ;;  %1746 = vrot.lane.b32.xlu0 %v2427_v17, %s2705_s19  ;;  %v2357_v23 = vld [vmem:[%s2821_s28 + $0x48] sm:$0x7f] }
 0x10a   : > { %v725_v25 = vpop.permute.xlu1 %724  ;;  %v723_v26 = vpop.permute.xlu0 %722 }
 0x10b   : > { %817 = vst.msk [vmem:[#allocation2 + $0x29] sm:$0x7f] %vm812_vm9, %v725_v25 }
 0x10c   : > { %816 = vst.msk [vmem:[#allocation2 + $0x21] sm:$0xff] %vm810_vm10, %v723_v26  ;;  %1335 = vrot.lane.b32.xlu1 %v2353_v24, %s2703_s7  ;;  %1365 = vrot.lane.b32.xlu0 %v2885_v14, %s2703_s7 }
 0x10e   : > { %v729_v28 = vpop.permute.xlu1 %728  ;;  %v727_v29 = vpop.permute.xlu0 %726 }
 0x10f   : > { %819 = vst.msk [vmem:[#allocation2 + $0x39] sm:$0x7f] %vm812_vm9, %v729_v28  ;;  %v853_v28 = vld [vmem:[%s2821_s28 + $0x48] sm:$0xff] }
 0x110   : > { %818 = vst.msk [vmem:[#allocation2 + $0x31] sm:$0xff] %vm810_vm10, %v727_v29  ;;  %1517 = vrot.lane.b32.xlu1 %v2844_v5, %s2704_s8  ;;  %1367 = vrot.lane.b32.xlu0 %v2369_v27, %s2703_s7 }
 0x112   : > { %v733_v15 = vpop.permute.xlu1 %732  ;;  %v731_v31 = vpop.permute.xlu0 %730 }
 0x113   : > { %821 = vst.msk [vmem:[#allocation2 + $0x49] sm:$0x7f] %vm812_vm9, %v733_v15  ;;  %v869_v15 = vld [vmem:[%s2821_s28 + $0xc8] sm:$0xff] }
 0x114   : > { %820 = vst.msk [vmem:[#allocation2 + $0x41] sm:$0xff] %vm810_vm10, %v731_v31  ;;  %918 = vrot.lane.b32.xlu1 %v849_v30, %s2701_s5  ;;  %1549 = vrot.lane.b32.xlu0 %v2885_v14, %s2704_s8 }
 0x116   : > { %v737_v16 = vpop.permute.xlu1 %736  ;;  %v735_v32 = vpop.permute.xlu0 %734 }
 0x117   : > { %823 = vst.msk [vmem:[#allocation2 + $0x59] sm:$0x7f] %vm812_vm9, %v737_v16 }
 0x118   : > { %822 = vst.msk [vmem:[#allocation2 + $0x51] sm:$0xff] %vm810_vm10, %v735_v32  ;;  %950 = vrot.lane.b32.xlu1 %v2977_v39, %s2701_s5  ;;  %948 = vrot.lane.b32.xlu0 %v2885_v14, %s2701_s5  ;;  %v1059_v14 = vld [vmem:[%s2821_s28 + $0x29] sm:$0x7f] }
 0x11a   : > { %v741_v5 = vpop.permute.xlu1 %740  ;;  %v739_v33 = vpop.permute.xlu0 %738 }
 0x11b   : > { %825 = vst.msk [vmem:[#allocation2 + $0x69] sm:$0x7f] %vm812_vm9, %v741_v5 }
 0x11c   : > { %824 = vst.msk [vmem:[#allocation2 + $0x61] sm:$0xff] %vm810_vm10, %v739_v33  ;;  %1551 = vrot.lane.b32.xlu1 %v2977_v39, %s2704_s8  ;;  %1519 = vrot.lane.b32.xlu0 %v849_v30, %s2704_s8  ;;  %v1075_v39 = vld [vmem:[%s2821_s28 + $0xa9] sm:$0x7f]  ;;  %v2432_v33 = vld [vmem:[%s2821_s28 + $0xc1] sm:$0xff] }
 0x11e   : > { %v745_v34 = vpop.permute.xlu1 %744  ;;  %v743_v36 = vpop.permute.xlu0 %742 }
 0x11f   : > { %827 = vst.msk [vmem:[#allocation2 + $0x79] sm:$0x7f] %vm812_vm9, %v745_v34  ;;  %v2416_v34 = vld [vmem:[%s2821_s28 + $0x41] sm:$0xff] }
 0x120   : > { %826 = vst.msk [vmem:[#allocation2 + $0x71] sm:$0xff] %vm810_vm10, %v743_v36  ;;  %1748 = vrot.lane.b32.xlu1 %v3066_v21, %s2705_s19  ;;  %1716 = vrot.lane.b32.xlu0 %v3025_v51, %s2705_s19 }
 0x122   : > { %v749_v18 = vpop.permute.xlu1 %748  ;;  %v747_v38 = vpop.permute.xlu0 %746 }
 0x123   : > { %829 = vst.msk [vmem:[#allocation2 + $0x89] sm:$0x7f] %vm812_vm9, %v749_v18  ;;  %v1063_v18 = vld [vmem:[%s2821_s28 + $0x49] sm:$0x7f] }
 0x124   : > { %828 = vst.msk [vmem:[#allocation2 + $0x81] sm:$0xff] %vm810_vm10, %v747_v38  ;;  %1128 = vrot.lane.b32.xlu1 %v1059_v14, %s2702_s6  ;;  %1126 = vrot.lane.b32.xlu0 %v3025_v51, %s2702_s6 }
 0x126   : > { %v753_v40 = vpop.permute.xlu1 %752  ;;  %v751_v19 = vpop.permute.xlu0 %750 }
 0x127   : > { %831 = vst.msk [vmem:[#allocation2 + $0x99] sm:$0x7f] %vm812_vm9, %v753_v40 }
 0x128   : > { %830 = vst.msk [vmem:[#allocation2 + $0x91] sm:$0xff] %vm810_vm10, %v751_v19  ;;  %1160 = vrot.lane.b32.xlu1 %v1075_v39, %s2702_s6  ;;  %1158 = vrot.lane.b32.xlu0 %v3066_v21, %s2702_s6  ;;  %v2371_v21 = vld [vmem:[%s2821_s28 + $0xb8] sm:$0x7f]  ;;  %v1079_v19 = vld [vmem:[%s2821_s28 + $0xc9] sm:$0x7f] }
 0x12a   : > { %v757_v42 = vpop.permute.xlu1 %756  ;;  %v755_v51 = vpop.permute.xlu0 %754 }
 0x12b   : > { %833 = vst.msk [vmem:[#allocation2 + $0xa9] sm:$0x7f] %vm812_vm9, %v757_v42 }
 0x12c   : > { %832 = vst.msk [vmem:[#allocation2 + $0xa1] sm:$0xff] %vm810_vm10, %v755_v51  ;;  %1750 = vrot.lane.b32.xlu1 %v2429_v41, %s2705_s19  ;;  %1718 = vrot.lane.b32.xlu0 %v2413_v4, %s2705_s19  ;;  %v2433_v51 = vld [vmem:[%s2821_s28 + $0xc9] sm:$0x7f] }
 0x12e   : > { %v761_v12 = vpop.permute.xlu1 %760  ;;  %v759_v44 = vpop.permute.xlu0 %758 }
 0x12f   : > { %835 = vst.msk [vmem:[#allocation2 + $0xb9] sm:$0x7f] %vm812_vm9, %v761_v12 }
 0x130   : > { %834 = vst.msk [vmem:[#allocation2 + $0xb1] sm:$0xff] %vm810_vm10, %v759_v44  ;;  %1369 = vrot.lane.b32.xlu1 %v2370_v2, %s2703_s7  ;;  %1337 = vrot.lane.b32.xlu0 %v2354_v43, %s2703_s7  ;;  %v2374_v44 = vld [vmem:[%s2821_s28 + $0xd0] sm:$0xff] }
 0x132   : > { %v765_v47 = vpop.permute.xlu1 %764  ;;  %v763_v46 = vpop.permute.xlu0 %762 }
 0x133   : > { %837 = vst.msk [vmem:[#allocation2 + $0xc9] sm:$0x7f] %vm812_vm9, %v765_v47 }
 0x134   : > { %836 = vst.msk [vmem:[#allocation2 + $0xc1] sm:$0xff] %vm810_vm10, %v763_v46  ;;  %1371 = vrot.lane.b32.xlu1 %v2371_v21, %s2703_s7  ;;  %1339 = vrot.lane.b32.xlu0 %v2355_v45, %s2703_s7  ;;  %v2358_v21 = vld [vmem:[%s2821_s28 + $0x50] sm:$0xff] }
 0x136   : > { %v769_v35 = vpop.permute.xlu1 %768  ;;  %v767_v63 = vpop.permute.xlu0 %766 }
 0x137   : > { %839 = vst.msk [vmem:[#allocation2 + $0xd9] sm:$0x7f] %vm812_vm9, %v769_v35  ;;  %v2375_v35 = vld [vmem:[%s2821_s28 + $0xd8] sm:$0x7f] }
 0x138   : > { %838 = vst.msk [vmem:[#allocation2 + $0xd1] sm:$0xff] %vm810_vm10, %v767_v63  ;;  %1553 = vrot.lane.b32.xlu1 %v2370_v2, %s2704_s8  ;;  %1521 = vrot.lane.b32.xlu0 %v2354_v43, %s2704_s8  ;;  %v2359_v63 = vld [vmem:[%s2821_s28 + $0x58] sm:$0x7f] }
 0x13a   : > { %v773_v50 = vpop.permute.xlu1 %772  ;;  %v771_v52 = vpop.permute.xlu0 %770 }
 0x13b   : > { %841 = vst.msk [vmem:[#allocation2 + $0xe9] sm:$0x7f] %vm812_vm9, %v773_v50 }
 0x13c   : > { %840 = vst.msk [vmem:[#allocation2 + $0xe1] sm:$0xff] %vm810_vm10, %v771_v52  ;;  %922 = vrot.lane.b32.xlu1 %v851_v48, %s2701_s5  ;;  %920 = vrot.lane.b32.xlu0 %v2354_v43, %s2701_s5 }
 0x13e   : > { %v777_v54 = vpop.permute.xlu1 %776  ;;  %v775_v6 = vpop.permute.xlu0 %774 }
 0x13f   : > { %843 = vst.msk [vmem:[#allocation2 + $0xf9] sm:$0x7f] %vm812_vm9, %v777_v54 }
 0x140   : > { %842 = vst.msk [vmem:[#allocation2 + $0xf1] sm:$0xff] %vm810_vm10, %v775_v6  ;;  %954 = vrot.lane.b32.xlu1 %v867_v53, %s2701_s5  ;;  %952 = vrot.lane.b32.xlu0 %v2370_v2, %s2701_s5  ;;  %v2417_v2 = vld [vmem:[%s2821_s28 + $0x49] sm:$0x7f]  ;;  %v855_v6 = vld [vmem:[%s2821_s28 + $0x58] sm:$0xff] }
 0x142   : > { %v911_v55 = vpop.permute.xlu1 %910  ;;  %v909_v56 = vpop.permute.xlu0 %908 }
 0x143   : > { %1006 = vst.msk [vmem:[#allocation2 + $0x8] sm:$0xff] %vm1004_vm11, %v911_v55  ;;  %1005 = vst.msk [vmem:[#allocation2] sm:$0xff] %vm1004_vm11, %v909_v56 }
 0x144   : > { %1038 = vst.msk [vmem:[#allocation2 + $0xf] sm:$0x1] %vm1037_vm12, %v2697_v0  ;;  %1555 = vrot.lane.b32.xlu1 %v867_v53, %s2704_s8  ;;  %1523 = vrot.lane.b32.xlu0 %v851_v48, %s2704_s8 }
 0x146   : > { %v915_v13 = vpop.permute.xlu1 %914  ;;  %v913_v57 = vpop.permute.xlu0 %912 }
 0x147   : > { %1008 = vst.msk [vmem:[#allocation2 + $0x18] sm:$0xff] %vm1004_vm11, %v915_v13  ;;  %1007 = vst.msk [vmem:[#allocation2 + $0x10] sm:$0xff] %vm1004_vm11, %v913_v57 }
 0x148   : > { %1039 = vst.msk [vmem:[#allocation2 + $0x1f] sm:$0x1] %vm1037_vm12, %v2697_v0  ;;  %1752 = vrot.lane.b32.xlu1 %v2430_v7, %s2705_s19  ;;  %1720 = vrot.lane.b32.xlu0 %v2414_v1, %s2705_s19 }
 0x14a   : > { %v941_v3 = vpop.permute.xlu1 %940  ;;  %v917_v8 = vpop.permute.xlu0 %916 }
 0x14b   : > { %1021 = vst.msk [vmem:[#allocation2 + $0x80] sm:$0xff] %vm1004_vm11, %v941_v3  ;;  %1009 = vst.msk [vmem:[#allocation2 + $0x20] sm:$0xff] %vm1004_vm11, %v917_v8  ;;  %v2434_v3 = vld [vmem:[%s2821_s28 + $0xd1] sm:$0xff] }
 0x14c   : > { %1132 = vrot.lane.b32.xlu1 %v1061_v58, %s2702_s6  ;;  %1130 = vrot.lane.b32.xlu0 %v2414_v1, %s2702_s6  ;;  %v2418_v8 = vld [vmem:[%s2821_s28 + $0x51] sm:$0xff] }
 0x14e   : > { %v1119_v60 = vpop.permute.xlu1 %1118  ;;  %v943_v37 = vpop.permute.xlu0 %942 }
 0x14f   : > { %1215 = vst.msk [vmem:[#allocation2] sm:$0xff] %vm1214_vm13, %v1119_v60 }
 0x150   : > { %1022 = vst.msk [vmem:[#allocation2 + $0x88] sm:$0xff] %vm1004_vm11, %v943_v37  ;;  %1164 = vrot.lane.b32.xlu1 %v1077_v59, %s2702_s6  ;;  %1162 = vrot.lane.b32.xlu0 %v2430_v7, %s2702_s6  ;;  %v871_v7 = vld [vmem:[%s2821_s28 + $0xd8] sm:$0xff] }
 0x151   : > { %1253 = vst.msk [vmem:[#allocation2] sm:$0x1] %vm1252_vm14, %v2697_v0  ;;  %v1065_v37 = vld [vmem:[%s2821_s28 + $0x59] sm:$0x7f] }
 0x152   : > { %1046 = vst.msk [vmem:[#allocation2 + $0x8f] sm:$0x1] %vm1037_vm12, %v2697_v0  ;;  %v1151_v62 = vpop.permute.xlu1 %1150  ;;  %v1121_v49 = vpop.permute.xlu0 %1120 }
 0x153   : > { %1232 = vst.msk [vmem:[#allocation2 + $0x80] sm:$0xff] %vm1214_vm13, %v1151_v62 }
 0x154   : > { %1217 = vst.msk [vmem:[#allocation2 + $0x8] sm:$0x7f] %vm1216_vm15, %v1121_v49  ;;  %1754 = vrot.lane.b32.xlu1 %v2431_v9, %s2705_s19  ;;  %1722 = vrot.lane.b32.xlu0 %v2415_v61, %s2705_s19 }
 0x155   : > { %1261 = vst.msk [vmem:[#allocation2 + $0x80] sm:$0x1] %vm1252_vm14, %v2697_v0 }
 0x156   : > { %v1330_v20 = vpop.permute.xlu1 %1329  ;;  %v1153_v17 = vpop.permute.xlu0 %1152 }
 0x157   : > { %1419 = vst.msk [vmem:[#allocation2 + $0x1] sm:$0xff] %vm1249_vm0, %v1330_v20 }
 0x158   : > { %1233 = vst.msk [vmem:[#allocation2 + $0x88] sm:$0x7f] %vm1216_vm15, %v1153_v17  ;;  %1373 = vrot.lane.b32.xlu1 %v2372_v10, %s2703_s7  ;;  %1341 = vrot.lane.b32.xlu0 %v2356_v11, %s2703_s7  ;;  %v2435_v17 = vld [vmem:[%s2821_s28 + $0xd9] sm:$0x7f] }
 0x15a   : > { %v1332_v24 = vpop.permute.xlu1 %1331  ;;  %v1362_v25 = vpop.permute.xlu0 %1361 }
 0x15b   : > { %1421 = vst.msk [vmem:[#allocation2 + $0x9] sm:$0x7f] %vm1420_vm1, %v1332_v24 }
 0x15c   : > { %1436 = vst.msk [vmem:[#allocation2 + $0x81] sm:$0xff] %vm1249_vm0, %v1362_v25  ;;  %1375 = vrot.lane.b32.xlu1 %v2373_v22, %s2703_s7  ;;  %1343 = vrot.lane.b32.xlu0 %v2357_v23, %s2703_s7  ;;  %v2419_v22 = vld [vmem:[%s2821_s28 + $0x59] sm:$0x7f]  ;;  %v2376_v25 = vld [vmem:[%s2821_s28 + $0xe0] sm:$0xff] }
 0x15e   : > { %v1514_v26 = vpop.permute.xlu1 %1513  ;;  %v1364_v27 = vpop.permute.xlu0 %1363 }
 0x15f   : > { %1603 = vst.msk [vmem:[#allocation2] sm:$0xff] %vm1450_vm2, %v1514_v26  ;;  %v2360_v26 = vld [vmem:[%s2821_s28 + $0x60] sm:$0xff] }
 0x160   : > { %1437 = vst.msk [vmem:[#allocation2 + $0x89] sm:$0x7f] %vm1420_vm1, %v1364_v27  ;;  %1557 = vrot.lane.b32.xlu1 %v2372_v10, %s2704_s8  ;;  %1525 = vrot.lane.b32.xlu0 %v2356_v11, %s2704_s8 }
 0x162   : > { %v945_v29 = vpop.permute.xlu1 %944  ;;  %v1546_v30 = vpop.permute.xlu0 %1545 }
 0x163   : > { %1023 = vst.msk [vmem:[#allocation2 + $0x90] sm:$0xff] %vm1004_vm11, %v945_v29 }
 0x164   : > { %1619 = vst.msk [vmem:[#allocation2 + $0x80] sm:$0xff] %vm1450_vm2, %v1546_v30  ;;  %926 = vrot.lane.b32.xlu1 %v853_v28, %s2701_s5  ;;  %924 = vrot.lane.b32.xlu0 %v2356_v11, %s2701_s5 }
 0x166   : > { %v1516_v31 = vpop.permute.xlu1 %1515  ;;  %v947_v16 = vpop.permute.xlu0 %946 }
 0x167   : > { %1604 = vst.msk [vmem:[#allocation2 + $0x8] sm:$0xff] %vm1450_vm2, %v1516_v31  ;;  %v2361_v31 = vld [vmem:[%s2821_s28 + $0x68] sm:$0x7f] }
 0x168   : > { %1024 = vst.msk [vmem:[#allocation2 + $0x98] sm:$0xff] %vm1004_vm11, %v947_v16  ;;  %958 = vrot.lane.b32.xlu1 %v869_v15, %s2701_s5  ;;  %956 = vrot.lane.b32.xlu0 %v2372_v10, %s2701_s5  ;;  %v1081_v10 = vld [vmem:[%s2821_s28 + $0xd9] sm:$0x7f] }
 0x169   : > { %1637 = vst.msk [vmem:[#allocation2 + $0xf] sm:$0x1] %vm1636_vm3, %v2697_v0 }
 0x16a   : > { %1047 = vst.msk [vmem:[#allocation2 + $0x9f] sm:$0x1] %vm1037_vm12, %v2697_v0  ;;  %v1713_v32 = vpop.permute.xlu1 %1712  ;;  %v1548_v5 = vpop.permute.xlu0 %1547 }
 0x16b   : > { %1802 = vst.msk [vmem:[#allocation2] sm:$0xff] %vm1633_vm4, %v1713_v32 }
 0x16c   : > { %1620 = vst.msk [vmem:[#allocation2 + $0x88] sm:$0xff] %vm1450_vm2, %v1548_v5  ;;  %1559 = vrot.lane.b32.xlu1 %v869_v15, %s2704_s8  ;;  %1527 = vrot.lane.b32.xlu0 %v853_v28, %s2704_s8  ;;  %v2377_v15 = vld [vmem:[%s2821_s28 + $0xe8] sm:$0x7f] }
 0x16d   : > { %1645 = vst.msk [vmem:[#allocation2 + $0x8f] sm:$0x1] %vm1636_vm3, %v2697_v0 }
 0x16e   : > { %v1123_v36 = vpop.permute.xlu1 %1122  ;;  %v1745_v14 = vpop.permute.xlu0 %1744 }
 0x16f   : > { %1218 = vst.msk [vmem:[#allocation2 + $0x10] sm:$0xff] %vm1214_vm13, %v1123_v36 }
 0x170   : > { %1819 = vst.msk [vmem:[#allocation2 + $0x80] sm:$0xff] %vm1633_vm4, %v1745_v14  ;;  %1756 = vrot.lane.b32.xlu1 %v2432_v33, %s2705_s19  ;;  %1724 = vrot.lane.b32.xlu0 %v2416_v34, %s2705_s19 }
 0x171   : > { %1254 = vst.msk [vmem:[#allocation2 + $0x10] sm:$0x1] %vm1252_vm14, %v2697_v0 }
 0x172   : > { %v1155_v38 = vpop.permute.xlu1 %1154  ;;  %v1125_v39 = vpop.permute.xlu0 %1124  ;;  %v1833_v40 = vld [vmem:[#allocation2] sm:$0xff] }
 0x173   : > { %1234 = vst.msk [vmem:[#allocation2 + $0x90] sm:$0xff] %vm1214_vm13, %v1155_v38  ;;  %2528 = vmatprep.mubr.msk.f32.mxu0 %vm1877_vm5, %v1833_v40 }
 0x174   : > { %1219 = vst.msk [vmem:[#allocation2 + $0x18] sm:$0x7f] %vm1216_vm15, %v1125_v39  ;;  %1136 = vrot.lane.b32.xlu1 %v1063_v18, %s2702_s6  ;;  %1134 = vrot.lane.b32.xlu0 %v2416_v34, %s2702_s6  ;;  %v857_v34 = vld [vmem:[%s2821_s28 + $0x68] sm:$0xff] }
 0x175   : > { %1262 = vst.msk [vmem:[#allocation2 + $0x90] sm:$0x1] %vm1252_vm14, %v2697_v0  ;;  %v873_v18 = vld [vmem:[%s2821_s28 + $0xe8] sm:$0xff] }
 0x176   : > { %v1715_v41 = vpop.permute.xlu1 %1714  ;;  %v1157_v4 = vpop.permute.xlu0 %1156 }
 0x177   : > { %v1849_v42 = vld [vmem:[#allocation2 + $0x80] sm:$0xff]  ;;  %1804 = vst.msk [vmem:[#allocation2 + $0x8] sm:$0x7f] %vm1803_vm6, %v1715_v41 }
 0x178   : > { %1235 = vst.msk [vmem:[#allocation2 + $0x98] sm:$0x7f] %vm1216_vm15, %v1157_v4  ;;  %2552 = vmatprep.mubr.msk.f32.mxu1 %vm1877_vm5, %v1849_v42  ;;  %1168 = vrot.lane.b32.xlu1 %v1079_v19, %s2702_s6  ;;  %v2436_v41 = vld [vmem:[%s2821_s28 + $0xe1] sm:$0xff] }
 0x179   : > { %1166 = vrot.lane.b32.xlu0 %v2432_v33, %s2702_s6  ;;  %v2420_v4 = vld [vmem:[%s2821_s28 + $0x61] sm:$0xff] }
 0x17a   : > { %v1334_v43 = vpop.permute.xlu1 %1333  ;;  %v1747_v12 = vpop.permute.xlu0 %1746 }
 0x17b   : > { %1422 = vst.msk [vmem:[#allocation2 + $0x11] sm:$0xff] %vm1249_vm0, %v1334_v43 }
 0x17c   : > { %1820 = vst.msk [vmem:[#allocation2 + $0x88] sm:$0x7f] %vm1803_vm6, %v1747_v12  ;;  %1758 = vrot.lane.b32.xlu1 %v2433_v51, %s2705_s19 }
 0x17d   : > { %1726 = vrot.lane.b32.xlu0 %v2417_v2, %s2705_s19  ;;  %v1067_v2 = vld [vmem:[%s2821_s28 + $0x69] sm:$0x7f] }
 0x17e   : > { %v1336_v45 = vpop.permute.xlu1 %1335  ;;  %v1366_v47 = vpop.permute.xlu0 %1365  ;;  %v1834_v46 = vld [vmem:[#allocation2 + $0x8] sm:$0xff] }
 0x17f   : > { %1423 = vst.msk [vmem:[#allocation2 + $0x19] sm:$0x7f] %vm1420_vm1, %v1336_v45  ;;  %2529 = vmatmul.mubr.msk.f32.vlgmr.msra.gmra.mxu0 %vm1877_vm5, %v1834_v46  ;;  %v1083_v45 = vld [vmem:[%s2821_s28 + $0xe9] sm:$0x7f] }
 0x180   : > { %1438 = vst.msk [vmem:[#allocation2 + $0x91] sm:$0xff] %vm1249_vm0, %v1366_v47  ;;  %1377 = vrot.lane.b32.xlu1 %v2374_v44, %s2703_s7 }
 0x181   : > { %1345 = vrot.lane.b32.xlu0 %v2358_v21, %s2703_s7 }
 0x182   : > { %v1518_v48 = vpop.permute.xlu1 %1517  ;;  %v1368_v50 = vpop.permute.xlu0 %1367 }
 0x183   : > { %v1850_v52 = vld [vmem:[#allocation2 + $0x88] sm:$0xff]  ;;  %1605 = vst.msk [vmem:[#allocation2 + $0x10] sm:$0xff] %vm1450_vm2, %v1518_v48 }
 0x184   : > { %1439 = vst.msk [vmem:[#allocation2 + $0x99] sm:$0x7f] %vm1420_vm1, %v1368_v50  ;;  %2553 = vmatmul.mubr.msk.f32.vlgmr.msra.gmra.mxu1 %vm1877_vm5, %v1850_v52  ;;  %1379 = vrot.lane.b32.xlu1 %v2375_v35, %s2703_s7  ;;  %v2437_v35 = vld [vmem:[%s2821_s28 + $0xe9] sm:$0x7f]  ;;  %v2378_v52 = vld [vmem:[%s2821_s28 + $0xf0] sm:$0xff] }
 0x185   : > { %1347 = vrot.lane.b32.xlu0 %v2359_v63, %s2703_s7  ;;  %v2421_v63 = vld [vmem:[%s2821_s28 + $0x69] sm:$0x7f] }
 0x186   : > { %v919_v53 = vpop.permute.xlu1 %918  ;;  %v1550_v54 = vpop.permute.xlu0 %1549 }
 0x187   : > { %1010 = vst.msk [vmem:[#allocation2 + $0x28] sm:$0xff] %vm1004_vm11, %v919_v53  ;;  %v2362_v53 = vld [vmem:[%s2821_s28 + $0x70] sm:$0xff] }
 0x188   : > { %1621 = vst.msk [vmem:[#allocation2 + $0x90] sm:$0xff] %vm1450_vm2, %v1550_v54  ;;  %1561 = vrot.lane.b32.xlu1 %v2374_v44, %s2704_s8 }
 0x189   : > { %1040 = vst.msk [vmem:[#allocation2 + $0x2f] sm:$0x1] %vm1037_vm12, %v2697_v0  ;;  %1529 = vrot.lane.b32.xlu0 %v2358_v21, %s2704_s8 }
 0x18a   : > { %v951_v55 = vpop.permute.xlu1 %950  ;;  %v949_v56 = vpop.permute.xlu0 %948 }
 0x18b   : > { %1026 = vst.msk [vmem:[#allocation2 + $0xa8] sm:$0xff] %vm1004_vm11, %v951_v55  ;;  %1025 = vst.msk [vmem:[#allocation2 + $0xa0] sm:$0xff] %vm1004_vm11, %v949_v56 }
 0x18c   : > { %1048 = vst.msk [vmem:[#allocation2 + $0xaf] sm:$0x1] %vm1037_vm12, %v2697_v0  ;;  %930 = vrot.lane.b32.xlu1 %v855_v6, %s2701_s5 }
 0x18d   : > { %928 = vrot.lane.b32.xlu0 %v2358_v21, %s2701_s5 }
 0x18e   : > { %v1552_v1 = vpop.permute.xlu1 %1551  ;;  %v1520_v13 = vpop.permute.xlu0 %1519 }
 0x18f   : > { %1622 = vst.msk [vmem:[#allocation2 + $0x98] sm:$0xff] %vm1450_vm2, %v1552_v1  ;;  %1606 = vst.msk [vmem:[#allocation2 + $0x18] sm:$0xff] %vm1450_vm2, %v1520_v13  ;;  %v2363_v1 = vld [vmem:[%s2821_s28 + $0x78] sm:$0x7f] }
 0x190   : > { %1646 = vst.msk [vmem:[#allocation2 + $0x9f] sm:$0x1] %vm1636_vm3, %v2697_v0  ;;  %1638 = vst.msk [vmem:[#allocation2 + $0x1f] sm:$0x1] %vm1636_vm3, %v2697_v0  ;;  %962 = vrot.lane.b32.xlu1 %v871_v7, %s2701_s5 }
 0x191   : > { %960 = vrot.lane.b32.xlu0 %v2374_v44, %s2701_s5 }
 0x192   : > { %v1749_v57 = vpop.permute.xlu1 %1748  ;;  %v1717_v58 = vpop.permute.xlu0 %1716 }
 0x193   : > { %1821 = vst.msk [vmem:[#allocation2 + $0x90] sm:$0xff] %vm1633_vm4, %v1749_v57  ;;  %1805 = vst.msk [vmem:[#allocation2 + $0x10] sm:$0xff] %vm1633_vm4, %v1717_v58 }
 0x194   : > { %1563 = vrot.lane.b32.xlu1 %v871_v7, %s2704_s8  ;;  %v2379_v7 = vld [vmem:[%s2821_s28 + $0xf8] sm:$0x7f] }
 0x195   : > { %1531 = vrot.lane.b32.xlu0 %v855_v6, %s2704_s8 }
 0x196   : > { %v1129_v59 = vpop.permute.xlu1 %1128  ;;  %v1127_v60 = vpop.permute.xlu0 %1126 }
 0x197   : > { %1221 = vst.msk [vmem:[#allocation2 + $0x28] sm:$0x7f] %vm1216_vm15, %v1129_v59 }
 0x198   : > { %1220 = vst.msk [vmem:[#allocation2 + $0x20] sm:$0xff] %vm1214_vm13, %v1127_v60  ;;  %1760 = vrot.lane.b32.xlu1 %v2434_v3, %s2705_s19 }
 0x199   : > { %1255 = vst.msk [vmem:[#allocation2 + $0x20] sm:$0x1] %vm1252_vm14, %v2697_v0  ;;  %1728 = vrot.lane.b32.xlu0 %v2418_v8, %s2705_s19 }
 0x19a   : > { %v1161_v9 = vpop.permute.xlu1 %1160  ;;  %v1159_v61 = vpop.permute.xlu0 %1158  ;;  %v1835_v62 = vld [vmem:[#allocation2 + $0x10] sm:$0xff] }
 0x19b   : > { %v1851_v49 = vld [vmem:[#allocation2 + $0x90] sm:$0xff]  ;;  %1237 = vst.msk [vmem:[#allocation2 + $0xa8] sm:$0x7f] %vm1216_vm15, %v1161_v9  ;;  %2531 = vmatprep.mubr.msk.f32.mxu0 %vm1877_vm5, %v1835_v62  ;;  %v2409_v62 = vld [vmem:[%s2821_s28 + $0xf8] sm:$0xff] }
 0x19c   : > { %1236 = vst.msk [vmem:[#allocation2 + $0xa0] sm:$0xff] %vm1214_vm13, %v1159_v61  ;;  %2555 = vmatprep.mubr.msk.f32.mxu1 %vm1877_vm5, %v1851_v49  ;;  %1140 = vrot.lane.b32.xlu1 %v1065_v37, %s2702_s6  ;;  %v2422_v61 = vld [vmem:[%s2821_s28 + $0x71] sm:$0xff] }
 0x19d   : > { %1263 = vst.msk [vmem:[#allocation2 + $0xa0] sm:$0x1] %vm1252_vm14, %v2697_v0  ;;  %1138 = vrot.lane.b32.xlu0 %v2418_v8, %s2702_s6  ;;  %v859_v8 = vld [vmem:[%s2821_s28 + $0x78] sm:$0xff] }
 0x19e   : > { %v1751_v11 = vpop.permute.xlu1 %1750  ;;  %v1719_v20 = vpop.permute.xlu0 %1718 }
 0x19f   : > { %1822 = vst.msk [vmem:[#allocation2 + $0x98] sm:$0x7f] %vm1803_vm6, %v1751_v11  ;;  %1806 = vst.msk [vmem:[#allocation2 + $0x18] sm:$0x7f] %vm1803_vm6, %v1719_v20  ;;  %v2438_v11 = vld [vmem:[%s2821_s28 + $0xf1] sm:$0xff] }
 0x1a0   : > { %1172 = vrot.lane.b32.xlu1 %v1081_v10, %s2702_s6 }
 0x1a1   : > { %1170 = vrot.lane.b32.xlu0 %v2434_v3, %s2702_s6 }
 0x1a2   : > { %v1370_v23 = vpop.permute.xlu1 %1369  ;;  %v1338_v24 = vpop.permute.xlu0 %1337 }
 0x1a3   : > { %1440 = vst.msk [vmem:[#allocation2 + $0xa1] sm:$0xff] %vm1249_vm0, %v1370_v23  ;;  %1424 = vst.msk [vmem:[#allocation2 + $0x21] sm:$0xff] %vm1249_vm0, %v1338_v24 }
 0x1a4   : > { %1762 = vrot.lane.b32.xlu1 %v2435_v17, %s2705_s19 }
 0x1a5   : > { %1730 = vrot.lane.b32.xlu0 %v2419_v22, %s2705_s19  ;;  %v1069_v22 = vld [vmem:[%s2821_s28 + $0x79] sm:$0x7f] }
 0x1a6   : > { %v1372_v27 = vpop.permute.xlu1 %1371  ;;  %v1340_v28 = vpop.permute.xlu0 %1339  ;;  %v1836_v29 = vld [vmem:[#allocation2 + $0x18] sm:$0xff] }
 0x1a7   : > { %v1852_v30 = vld [vmem:[#allocation2 + $0x98] sm:$0xff]  ;;  %1441 = vst.msk [vmem:[#allocation2 + $0xa9] sm:$0x7f] %vm1420_vm1, %v1372_v27  ;;  %1425 = vst.msk [vmem:[#allocation2 + $0x29] sm:$0x7f] %vm1420_vm1, %v1340_v28  ;;  %2532 = vmatmul.mubr.msk.f32.gmra.mxu0 %vm1877_vm5, %v1836_v29 }
 0x1a8   : > { %2556 = vmatmul.mubr.msk.f32.gmra.mxu1 %vm1877_vm5, %v1852_v30  ;;  %1381 = vrot.lane.b32.xlu1 %v2376_v25, %s2703_s7  ;;  %v2423_v27 = vld [vmem:[%s2821_s28 + $0x79] sm:$0x7f] }
 0x1a9   : > { %1349 = vrot.lane.b32.xlu0 %v2360_v26, %s2703_s7  ;;  %v2439_v30 = vld [vmem:[%s2821_s28 + $0xf9] sm:$0x7f] }
 0x1aa   : > { %v1554_v16 = vpop.permute.xlu1 %1553  ;;  %v1522_v32 = vpop.permute.xlu0 %1521 }
 0x1ab   : > { %1623 = vst.msk [vmem:[#allocation2 + $0xa0] sm:$0xff] %vm1450_vm2, %v1554_v16  ;;  %1607 = vst.msk [vmem:[#allocation2 + $0x20] sm:$0xff] %vm1450_vm2, %v1522_v32  ;;  %v2364_v32 = vld [vmem:[%s2821_s28 + $0x80] sm:$0xff] }
 0x1ac   : > { %1383 = vrot.lane.b32.xlu1 %v2377_v15, %s2703_s7  ;;  %v1085_v15 = vld [vmem:[%s2821_s28 + $0xf9] sm:$0x7f] }
 0x1ad   : > { %1351 = vrot.lane.b32.xlu0 %v2361_v31, %s2703_s7 }
 0x1ae   : > { %v923_v5 = vpop.permute.xlu1 %922  ;;  %v921_v33 = vpop.permute.xlu0 %920 }
 0x1af   : > { %1012 = vst.msk [vmem:[#allocation2 + $0x38] sm:$0xff] %vm1004_vm11, %v923_v5  ;;  %1011 = vst.msk [vmem:[#allocation2 + $0x30] sm:$0xff] %vm1004_vm11, %v921_v33  ;;  %v2365_v5 = vld [vmem:[%s2821_s28 + $0x88] sm:$0x7f] }
 0x1b0   : > { %1041 = vst.msk [vmem:[#allocation2 + $0x3f] sm:$0x1] %vm1037_vm12, %v2697_v0  ;;  %1565 = vrot.lane.b32.xlu1 %v2376_v25, %s2704_s8 }
 0x1b1   : > { %1533 = vrot.lane.b32.xlu0 %v2360_v26, %s2704_s8 }
 0x1b2   : > { %v955_v36 = vpop.permute.xlu1 %954  ;;  %v953_v14 = vpop.permute.xlu0 %952 }
 0x1b3   : > { %1028 = vst.msk [vmem:[#allocation2 + $0xb8] sm:$0xff] %vm1004_vm11, %v955_v36  ;;  %1027 = vst.msk [vmem:[#allocation2 + $0xb0] sm:$0xff] %vm1004_vm11, %v953_v14 }
 0x1b4   : > { %1049 = vst.msk [vmem:[#allocation2 + $0xbf] sm:$0x1] %vm1037_vm12, %v2697_v0  ;;  %934 = vrot.lane.b32.xlu1 %v857_v34, %s2701_s5 }
 0x1b5   : > { %932 = vrot.lane.b32.xlu0 %v2360_v26, %s2701_s5 }
 0x1b6   : > { %v1556_v38 = vpop.permute.xlu1 %1555  ;;  %v1524_v39 = vpop.permute.xlu0 %1523 }
 0x1b7   : > { %1624 = vst.msk [vmem:[#allocation2 + $0xa8] sm:$0xff] %vm1450_vm2, %v1556_v38  ;;  %1608 = vst.msk [vmem:[#allocation2 + $0x28] sm:$0xff] %vm1450_vm2, %v1524_v39 }
 0x1b8   : > { %1647 = vst.msk [vmem:[#allocation2 + $0xaf] sm:$0x1] %vm1636_vm3, %v2697_v0  ;;  %1639 = vst.msk [vmem:[#allocation2 + $0x2f] sm:$0x1] %vm1636_vm3, %v2697_v0  ;;  %966 = vrot.lane.b32.xlu1 %v873_v18, %s2701_s5 }
 0x1b9   : > { %964 = vrot.lane.b32.xlu0 %v2376_v25, %s2701_s5 }
 0x1ba   : > { %v1753_v40 = vpop.permute.xlu1 %1752  ;;  %v1721_v19 = vpop.permute.xlu0 %1720 }
 0x1bb   : > { %1823 = vst.msk [vmem:[#allocation2 + $0xa0] sm:$0xff] %vm1633_vm4, %v1753_v40  ;;  %1807 = vst.msk [vmem:[#allocation2 + $0x20] sm:$0xff] %vm1633_vm4, %v1721_v19  ;;  %v2424_v40 = vld [vmem:[%s2821_s28 + $0x81] sm:$0xff]  ;;  %v2425_v19 = vld [vmem:[%s2821_s28 + $0x89] sm:$0x7f] }
 0x1bc   : > { %1567 = vrot.lane.b32.xlu1 %v873_v18, %s2704_s8  ;;  %v2395_v18 = vld [vmem:[%s2821_s28 + $0x88] sm:$0xff]  ;;  %s161_s28 = sand.u32 1, %s2687_s13  }
 0x1bd   : > { %1535 = vrot.lane.b32.xlu0 %v857_v34, %s2704_s8 }
 0x1be   : > { %v1133_v42 = vpop.permute.xlu1 %1132  ;;  %v1131_v51 = vpop.permute.xlu0 %1130 }
 0x1bf   : > { %1223 = vst.msk [vmem:[#allocation2 + $0x38] sm:$0x7f] %vm1216_vm15, %v1133_v42 }
 0x1c0   : > { %1222 = vst.msk [vmem:[#allocation2 + $0x30] sm:$0xff] %vm1214_vm13, %v1131_v51  ;;  %1764 = vrot.lane.b32.xlu1 %v2436_v41, %s2705_s19 }
 0x1c1   : > { %1256 = vst.msk [vmem:[#allocation2 + $0x30] sm:$0x1] %vm1252_vm14, %v2697_v0  ;;  %1732 = vrot.lane.b32.xlu0 %v2420_v4, %s2705_s19 }
 0x1c2   : > { %v1165_v43 = vpop.permute.xlu1 %1164  ;;  %v1163_v12 = vpop.permute.xlu0 %1162  ;;  %v1837_v44 = vld [vmem:[#allocation2 + $0x20] sm:$0xff] }
 0x1c3   : > { %v1853_v21 = vld [vmem:[#allocation2 + $0xa0] sm:$0xff]  ;;  %1239 = vst.msk [vmem:[#allocation2 + $0xb8] sm:$0x7f] %vm1216_vm15, %v1165_v43  ;;  %2534 = vmatprep.mubr.msk.f32.mxu0 %vm1877_vm5, %v1837_v44 }
 0x1c4   : > { %1238 = vst.msk [vmem:[#allocation2 + $0xb0] sm:$0xff] %vm1214_vm13, %v1163_v12  ;;  %2558 = vmatprep.mubr.msk.f32.mxu1 %vm1877_vm5, %v1853_v21  ;;  %1144 = vrot.lane.b32.xlu1 %v1067_v2, %s2702_s6 }
 0x1c5   : > { %1264 = vst.msk [vmem:[#allocation2 + $0xb0] sm:$0x1] %vm1252_vm14, %v2697_v0  ;;  %1142 = vrot.lane.b32.xlu0 %v2420_v4, %s2702_s6 }
 0x1c6   : > { %v1755_v47 = vpop.permute.xlu1 %1754  ;;  %v1723_v46 = vpop.permute.xlu0 %1722 }
 0x1c7   : > { %1824 = vst.msk [vmem:[#allocation2 + $0xa8] sm:$0x7f] %vm1803_vm6, %v1755_v47  ;;  %1808 = vst.msk [vmem:[#allocation2 + $0x28] sm:$0x7f] %vm1803_vm6, %v1723_v46 }
 0x1c8   : > { %1176 = vrot.lane.b32.xlu1 %v1083_v45, %s2702_s6 }
 0x1c9   : > { %1174 = vrot.lane.b32.xlu0 %v2436_v41, %s2702_s6 }
 0x1ca   : > { %v1374_v48 = vpop.permute.xlu1 %1373  ;;  %v1342_v50 = vpop.permute.xlu0 %1341 }
 0x1cb   : > { %1442 = vst.msk [vmem:[#allocation2 + $0xb1] sm:$0xff] %vm1249_vm0, %v1374_v48  ;;  %1426 = vst.msk [vmem:[#allocation2 + $0x31] sm:$0xff] %vm1249_vm0, %v1342_v50 }
 0x1cc   : > { %1766 = vrot.lane.b32.xlu1 %v2437_v35, %s2705_s19 }
 0x1cd   : > { %1734 = vrot.lane.b32.xlu0 %v2421_v63, %s2705_s19 }
 0x1ce   : > { %v1376_v54 = vpop.permute.xlu1 %1375  ;;  %v1344_v6 = vpop.permute.xlu0 %1343  ;;  %v1838_v55 = vld [vmem:[#allocation2 + $0x28] sm:$0xff] }
 0x1cf   : > { %v1854_v56 = vld [vmem:[#allocation2 + $0xa8] sm:$0xff]  ;;  %1443 = vst.msk [vmem:[#allocation2 + $0xb9] sm:$0x7f] %vm1420_vm1, %v1376_v54  ;;  %1427 = vst.msk [vmem:[#allocation2 + $0x39] sm:$0x7f] %vm1420_vm1, %v1344_v6  ;;  %2535 = vmatmul.mubr.msk.f32.gmra.mxu0 %vm1877_vm5, %v1838_v55 }
 0x1d0   : > { %2559 = vmatmul.mubr.msk.f32.gmra.mxu1 %vm1877_vm5, %v1854_v56  ;;  %1385 = vrot.lane.b32.xlu1 %v2378_v52, %s2703_s7 }
 0x1d1   : > { %1353 = vrot.lane.b32.xlu0 %v2362_v53, %s2703_s7 }
 0x1d2   : > { %v1558_v13 = vpop.permute.xlu1 %1557  ;;  %v1526_v57 = vpop.permute.xlu0 %1525 }
 0x1d3   : > { %1625 = vst.msk [vmem:[#allocation2 + $0xb0] sm:$0xff] %vm1450_vm2, %v1558_v13  ;;  %1609 = vst.msk [vmem:[#allocation2 + $0x30] sm:$0xff] %vm1450_vm2, %v1526_v57 }
 0x1d4   : > { %1387 = vrot.lane.b32.xlu1 %v2379_v7, %s2703_s7 }
 0x1d5   : > { %1355 = vrot.lane.b32.xlu0 %v2363_v1, %s2703_s7 }
 0x1d6   : > { %v927_v58 = vpop.permute.xlu1 %926  ;;  %v925_v3 = vpop.permute.xlu0 %924 }
 0x1d7   : > { %1014 = vst.msk [vmem:[#allocation2 + $0x48] sm:$0xff] %vm1004_vm11, %v927_v58  ;;  %1013 = vst.msk [vmem:[#allocation2 + $0x40] sm:$0xff] %vm1004_vm11, %v925_v3 }
 0x1d8   : > { %1042 = vst.msk [vmem:[#allocation2 + $0x4f] sm:$0x1] %vm1037_vm12, %v2697_v0  ;;  %1569 = vrot.lane.b32.xlu1 %v2378_v52, %s2704_s8 }
 0x1d9   : > { %1537 = vrot.lane.b32.xlu0 %v2362_v53, %s2704_s8 }
 0x1da   : > { %v959_v59 = vpop.permute.xlu1 %958  ;;  %v957_v60 = vpop.permute.xlu0 %956 }
 0x1db   : > { %1030 = vst.msk [vmem:[#allocation2 + $0xc8] sm:$0xff] %vm1004_vm11, %v959_v59  ;;  %1029 = vst.msk [vmem:[#allocation2 + $0xc0] sm:$0xff] %vm1004_vm11, %v957_v60 }
 0x1dc   : > { %1050 = vst.msk [vmem:[#allocation2 + $0xcf] sm:$0x1] %vm1037_vm12, %v2697_v0  ;;  %938 = vrot.lane.b32.xlu1 %v859_v8, %s2701_s5 }
 0x1dd   : > { %936 = vrot.lane.b32.xlu0 %v2362_v53, %s2701_s5 }
 0x1de   : > { %v1560_v37 = vpop.permute.xlu1 %1559  ;;  %v1528_v9 = vpop.permute.xlu0 %1527 }
 0x1df   : > { %1626 = vst.msk [vmem:[#allocation2 + $0xb8] sm:$0xff] %vm1450_vm2, %v1560_v37  ;;  %1610 = vst.msk [vmem:[#allocation2 + $0x38] sm:$0xff] %vm1450_vm2, %v1528_v9 }
 0x1e0   : > { %1648 = vst.msk [vmem:[#allocation2 + $0xbf] sm:$0x1] %vm1636_vm3, %v2697_v0  ;;  %1640 = vst.msk [vmem:[#allocation2 + $0x3f] sm:$0x1] %vm1636_vm3, %v2697_v0  ;;  %1539 = vrot.lane.b32.xlu1 %v859_v8, %s2704_s8 }
 0x1e1   : > { %968 = vrot.lane.b32.xlu0 %v2378_v52, %s2701_s5 }
 0x1e2   : > { %v1757_v49 = vpop.permute.xlu1 %1756  ;;  %v1725_v10 = vpop.permute.xlu0 %1724 }
 0x1e3   : > { %1825 = vst.msk [vmem:[#allocation2 + $0xb0] sm:$0xff] %vm1633_vm4, %v1757_v49  ;;  %1809 = vst.msk [vmem:[#allocation2 + $0x30] sm:$0xff] %vm1633_vm4, %v1725_v10 }
 0x1e4   : > { %1736 = vrot.lane.b32.xlu1 %v2422_v61, %s2705_s19 }
 0x1e5   : > { %1571 = vrot.lane.b32.xlu0 %v2409_v62, %s2704_s8 }
 0x1e6   : > { %v1137_v20 = vpop.permute.xlu1 %1136  ;;  %v1135_v17 = vpop.permute.xlu0 %1134 }
 0x1e7   : > { %1225 = vst.msk [vmem:[#allocation2 + $0x48] sm:$0x7f] %vm1216_vm15, %v1137_v20  ;;  %v3816_v20 = vld [vmem:[%s4002_s2] ss:$0 sm:$0xff] }
 0x1e8   : > { %1224 = vst.msk [vmem:[#allocation2 + $0x40] sm:$0xff] %vm1214_vm13, %v1135_v17  ;;  %970 = vrot.lane.b32.xlu1 %v2409_v62, %s2701_s5 }
 0x1e9   : > { %1257 = vst.msk [vmem:[#allocation2 + $0x40] sm:$0x1] %vm1252_vm14, %v2697_v0  ;;  %1768 = vrot.lane.b32.xlu0 %v2438_v11, %s2705_s19 }
 0x1ea   : > { %v1169_v23 = vpop.permute.xlu1 %1168  ;;  %v1839_v25 = vld [vmem:[#allocation2 + $0x30] sm:$0xff] }
 0x1eb   : > { %v1167_v24 = vpop.permute.xlu0 %1166  ;;  %v1855_v26 = vld [vmem:[#allocation2 + $0xb0] sm:$0xff]  ;;  %1241 = vst.msk [vmem:[#allocation2 + $0xc8] sm:$0x7f] %vm1216_vm15, %v1169_v23  ;;  %2537 = vmatprep.mubr.msk.f32.mxu0 %vm1877_vm5, %v1839_v25 }
 0x1ec   : > { %1240 = vst.msk [vmem:[#allocation2 + $0xc0] sm:$0xff] %vm1214_vm13, %v1167_v24  ;;  %2561 = vmatprep.mubr.msk.f32.mxu1 %vm1877_vm5, %v1855_v26  ;;  %1148 = vrot.lane.b32.xlu1 %v1069_v22, %s2702_s6 }
 0x1ed   : > { %1265 = vst.msk [vmem:[#allocation2 + $0xc0] sm:$0x1] %vm1252_vm14, %v2697_v0  ;;  %1146 = vrot.lane.b32.xlu0 %v2422_v61, %s2702_s6 }
 0x1ee   : > { %v1759_v28 = vpop.permute.xlu1 %1758 }
 0x1ef   : > { %v1727_v29 = vpop.permute.xlu0 %1726  ;;  %1826 = vst.msk [vmem:[#allocation2 + $0xb8] sm:$0x7f] %vm1803_vm6, %v1759_v28 }
 0x1f0   : > { %1810 = vst.msk [vmem:[#allocation2 + $0x38] sm:$0x7f] %vm1803_vm6, %v1727_v29  ;;  %1738 = vrot.lane.b32.xlu1 %v2423_v27, %s2705_s19 }
 0x1f1   : > { %1178 = vrot.lane.b32.xlu0 %v2438_v11, %s2702_s6 }
 0x1f2   : > { %v1378_v31 = vpop.permute.xlu1 %1377 }
 0x1f3   : > { %v1346_v16 = vpop.permute.xlu0 %1345  ;;  %1444 = vst.msk [vmem:[#allocation2 + $0xc1] sm:$0xff] %vm1249_vm0, %v1378_v31 }
 0x1f4   : > { %1428 = vst.msk [vmem:[#allocation2 + $0x41] sm:$0xff] %vm1249_vm0, %v1346_v16  ;;  %1180 = vrot.lane.b32.xlu1 %v1085_v15, %s2702_s6  ;;  %s2347_s6 = sshll.u32 %s161_s28, 8 }
 0x1f5   : > { %1770 = vrot.lane.b32.xlu0 %v2439_v30, %s2705_s19 }
 0x1f6   : > { %v1380_v33 = vpop.permute.xlu1 %1379  ;;  %v1856_v14 = vld [vmem:[#allocation2 + $0xb8] sm:$0xff] }
 0x1f7   : > { %v1348_v34 = vpop.permute.xlu0 %1347  ;;  %v1840_v36 = vld [vmem:[#allocation2 + $0x38] sm:$0xff]  ;;  %1445 = vst.msk [vmem:[#allocation2 + $0xc9] sm:$0x7f] %vm1420_vm1, %v1380_v33  ;;  %2562 = vmatmul.mubr.msk.f32.gmra.mxu1 %vm1877_vm5, %v1856_v14 }
 0x1f8   : > { %1429 = vst.msk [vmem:[#allocation2 + $0x49] sm:$0x7f] %vm1420_vm1, %v1348_v34  ;;  %2538 = vmatmul.mubr.msk.f32.gmra.mxu0 %vm1877_vm5, %v1840_v36  ;;  %1359 = vrot.lane.b32.xlu1 %v2365_v5, %s2703_s7 }
 0x1f9   : > { %1357 = vrot.lane.b32.xlu0 %v2364_v32, %s2703_s7  ;;  %s3826_s7 = scalar_lea.vmem [#allocation3], %s2347_s6 }
 0x1fa   : > { %v1562_v38 = vpop.permute.xlu1 %1561  ;;  %s2281_s9 = sshll.u32 %s3826_s7, 4  ;;  %s3954_s9 = int_to_ptr.vmem [resolvable:$true] %s2281_s9 }
 0x1fb   : > { %v1530_v39 = vpop.permute.xlu0 %1529  ;;  %1627 = vst.msk [vmem:[#allocation2 + $0xc0] sm:$0xff] %vm1450_vm2, %v1562_v38  ;;  %p2642_p0 = scmp.lt.s32.totalorder %s3954_s9, %s2640_s24 }
 0x1fc   : > { %1611 = vst.msk [vmem:[#allocation2 + $0x40] sm:$0xff] %vm1450_vm2, %v1530_v39  ;;  %1543 = vrot.lane.b32.xlu1 %v2395_v18, %s2704_s8 }
 0x1fd   : > { %1541 = vrot.lane.b32.xlu0 %v2364_v32, %s2704_s8  ;;  %s2480_s8 = sshll.u32 %s2749_s16, 12  ;;  %s3959_s16 = scalar_lea.sflag [#allocation4], %s161_s28 }
 0x1fe   : > { %v931_v41 = vpop.permute.xlu1 %930  ;;  %s3951_s17 = scalar_lea.hbm %s4003_s3, %s2480_s8 }
 0x1ff   : > { %v929_v4 = vpop.permute.xlu0 %928  ;;  %1016 = vst.msk [vmem:[#allocation2 + $0x58] sm:$0xff] %vm1004_vm11, %v931_v41 }
 0x200   : > { %1015 = vst.msk [vmem:[#allocation2 + $0x50] sm:$0xff] %vm1004_vm11, %v929_v4  ;;  %1742 = vrot.lane.b32.xlu1 %v2425_v19, %s2705_s19 }
 0x201   : > { %1043 = vst.msk [vmem:[#allocation2 + $0x5f] sm:$0x1] %vm1037_vm12, %v2697_v0  ;;  %1740 = vrot.lane.b32.xlu0 %v2424_v40, %s2705_s19  ;;  %s2635_s19 = scalar_lea.vmem %s3954_s9, 4096 }
 0x202   : > { %v963_v42 = vpop.permute.xlu1 %962  ;;  %p2636_p11 = scmp.ne.s32.totalorder %s3954_s9, %s2635_s19  ;;  %p2643_p1 = scmp.lt.s32.totalorder %s2641_s25, %s2635_s19 }
 0x203   : > { %v961_v51 = vpop.permute.xlu0 %960  ;;  %1032 = vst.msk [vmem:[#allocation2 + $0xd8] sm:$0xff] %vm1004_vm11, %v963_v42 }
 0x204   : > { %1031 = vst.msk [vmem:[#allocation2 + $0xd0] sm:$0xff] %vm1004_vm11, %v961_v51  ;;  %p2637_p12 = pnand %p2636_p11, %p2766_p5  ;;  %p2644_p2 = por %p2643_p1, %p2642_p0 }
 0x205   : > { %1051 = vst.msk [vmem:[#allocation2 + $0xdf] sm:$0x1] %vm1037_vm12, %v2697_v0 }
 0x206   : > { %v1564_v2 = vpop.permute.xlu1 %1563  ;;  %p2638_p13 = pneg %p2637_p12 }
 0x207   : > { %v1532_v43 = vpop.permute.xlu0 %1531  ;;  %1628 = vst.msk [vmem:[#allocation2 + $0xc8] sm:$0xff] %vm1450_vm2, %v1564_v2 }
 0x208   : > { %1612 = vst.msk [vmem:[#allocation2 + $0x48] sm:$0xff] %vm1450_vm2, %v1532_v43  ;;  %p2645_p3 = pnand %p2644_p2, %p2638_p13 }
 0x209   : > { %1649 = vst.msk [vmem:[#allocation2 + $0xcf] sm:$0x1] %vm1636_vm3, %v2697_v0  ;;  %1641 = vst.msk [vmem:[#allocation2 + $0x4f] sm:$0x1] %vm1636_vm3, %v2697_v0 }
 0x20a   : > { %v1761_v12 = vpop.permute.xlu1 %1760 }
 0x20b   : > { %v1729_v44 = vpop.permute.xlu0 %1728  ;;  %1827 = vst.msk [vmem:[#allocation2 + $0xc0] sm:$0xff] %vm1633_vm4, %v1761_v12 }
 0x20c   : > { %1811 = vst.msk [vmem:[#allocation2 + $0x40] sm:$0xff] %vm1633_vm4, %v1729_v44 }
 0x20e   : > { %v1141_v21 = vpop.permute.xlu1 %1140 }
 0x20f   : > { %v1139_v45 = vpop.permute.xlu0 %1138  ;;  %1227 = vst.msk [vmem:[#allocation2 + $0x58] sm:$0x7f] %vm1216_vm15, %v1141_v21 }
 0x210   : > { %1226 = vst.msk [vmem:[#allocation2 + $0x50] sm:$0xff] %vm1214_vm13, %v1139_v45 }
 0x211   : > { %1258 = vst.msk [vmem:[#allocation2 + $0x50] sm:$0x1] %vm1252_vm14, %v2697_v0 }
 0x212   : > { %v1173_v47 = vpop.permute.xlu1 %1172  ;;  %v1857_v63 = vld [vmem:[#allocation2 + $0xc0] sm:$0xff] }
 0x213   : > { %v1171_v46 = vpop.permute.xlu0 %1170  ;;  %v1841_v35 = vld [vmem:[#allocation2 + $0x40] sm:$0xff]  ;;  %1243 = vst.msk [vmem:[#allocation2 + $0xd8] sm:$0x7f] %vm1216_vm15, %v1173_v47  ;;  %2564 = vmatprep.mubr.msk.f32.mxu1 %vm1877_vm5, %v1857_v63 }
 0x214   : > { %1242 = vst.msk [vmem:[#allocation2 + $0xd0] sm:$0xff] %vm1214_vm13, %v1171_v46  ;;  %2540 = vmatprep.mubr.msk.f32.mxu0 %vm1877_vm5, %v1841_v35 }
 0x215   : > { %1266 = vst.msk [vmem:[#allocation2 + $0xd0] sm:$0x1] %vm1252_vm14, %v2697_v0 }
 0x216   : > { %v1763_v48 = vpop.permute.xlu1 %1762 }
 0x217   : > { %v1731_v50 = vpop.permute.xlu0 %1730  ;;  %1828 = vst.msk [vmem:[#allocation2 + $0xc8] sm:$0x7f] %vm1803_vm6, %v1763_v48 }
 0x218   : > { %1812 = vst.msk [vmem:[#allocation2 + $0x48] sm:$0x7f] %vm1803_vm6, %v1731_v50 }
 0x21a   : > { %v1382_v52 = vpop.permute.xlu1 %1381 }
 0x21b   : > { %v1350_v53 = vpop.permute.xlu0 %1349  ;;  %1446 = vst.msk [vmem:[#allocation2 + $0xd1] sm:$0xff] %vm1249_vm0, %v1382_v52 }
 0x21c   : > { %1430 = vst.msk [vmem:[#allocation2 + $0x51] sm:$0xff] %vm1249_vm0, %v1350_v53 }
 0x21e   : > { %v1384_v54 = vpop.permute.xlu1 %1383  ;;  %v1858_v56 = vld [vmem:[#allocation2 + $0xc8] sm:$0xff] }
 0x21f   : > { %v1352_v6 = vpop.permute.xlu0 %1351  ;;  %v1842_v55 = vld [vmem:[#allocation2 + $0x48] sm:$0xff]  ;;  %1447 = vst.msk [vmem:[#allocation2 + $0xd9] sm:$0x7f] %vm1420_vm1, %v1384_v54  ;;  %2565 = vmatmul.mubr.msk.f32.gmra.mxu1 %vm1877_vm5, %v1858_v56 }
 0x220   : > { %1431 = vst.msk [vmem:[#allocation2 + $0x59] sm:$0x7f] %vm1420_vm1, %v1352_v6  ;;  %2541 = vmatmul.mubr.msk.f32.gmra.mxu0 %vm1877_vm5, %v1842_v55 }
 0x222   : > { %v1566_v7 = vpop.permute.xlu1 %1565 }
 0x223   : > { %v1534_v1 = vpop.permute.xlu0 %1533  ;;  %1629 = vst.msk [vmem:[#allocation2 + $0xd0] sm:$0xff] %vm1450_vm2, %v1566_v7 }
 0x224   : > { %1613 = vst.msk [vmem:[#allocation2 + $0x50] sm:$0xff] %vm1450_vm2, %v1534_v1 }
 0x226   : > { %v935_v13 = vpop.permute.xlu1 %934 }
 0x227   : > { %v933_v57 = vpop.permute.xlu0 %932  ;;  %1018 = vst.msk [vmem:[#allocation2 + $0x68] sm:$0xff] %vm1004_vm11, %v935_v13 }
 0x228   : > { %1017 = vst.msk [vmem:[#allocation2 + $0x60] sm:$0xff] %vm1004_vm11, %v933_v57 }
 0x229   : > { %1044 = vst.msk [vmem:[#allocation2 + $0x6f] sm:$0x1] %vm1037_vm12, %v2697_v0 }
 0x22a   : > { %v967_v58 = vpop.permute.xlu1 %966 }
 0x22b   : > { %v965_v3 = vpop.permute.xlu0 %964  ;;  %1034 = vst.msk [vmem:[#allocation2 + $0xe8] sm:$0xff] %vm1004_vm11, %v967_v58 }
 0x22c   : > { %1033 = vst.msk [vmem:[#allocation2 + $0xe0] sm:$0xff] %vm1004_vm11, %v965_v3 }
 0x22d   : > { %1052 = vst.msk [vmem:[#allocation2 + $0xef] sm:$0x1] %vm1037_vm12, %v2697_v0 }
 0x22e   : > { %v1568_v8 = vpop.permute.xlu1 %1567 }
 0x22f   : > { %v1536_v59 = vpop.permute.xlu0 %1535  ;;  %1630 = vst.msk [vmem:[#allocation2 + $0xd8] sm:$0xff] %vm1450_vm2, %v1568_v8 }
 0x230   : > { %1614 = vst.msk [vmem:[#allocation2 + $0x58] sm:$0xff] %vm1450_vm2, %v1536_v59 }
 0x231   : > { %1650 = vst.msk [vmem:[#allocation2 + $0xdf] sm:$0x1] %vm1636_vm3, %v2697_v0  ;;  %1642 = vst.msk [vmem:[#allocation2 + $0x5f] sm:$0x1] %vm1636_vm3, %v2697_v0 }
 0x232   : > { %v1765_v60 = vpop.permute.xlu1 %1764 }
 0x233   : > { %v1733_v37 = vpop.permute.xlu0 %1732  ;;  %1829 = vst.msk [vmem:[#allocation2 + $0xd0] sm:$0xff] %vm1633_vm4, %v1765_v60 }
 0x234   : > { %1813 = vst.msk [vmem:[#allocation2 + $0x50] sm:$0xff] %vm1633_vm4, %v1733_v37 }
 0x236   : > { %v1145_v9 = vpop.permute.xlu1 %1144 }
 0x237   : > { %v1143_v61 = vpop.permute.xlu0 %1142  ;;  %1229 = vst.msk [vmem:[#allocation2 + $0x68] sm:$0x7f] %vm1216_vm15, %v1145_v9 }
 0x238   : > { %1228 = vst.msk [vmem:[#allocation2 + $0x60] sm:$0xff] %vm1214_vm13, %v1143_v61 }
 0x239   : > { %1259 = vst.msk [vmem:[#allocation2 + $0x60] sm:$0x1] %vm1252_vm14, %v2697_v0 }
 0x23a   : > { %v1177_v62 = vpop.permute.xlu1 %1176  ;;  %v1859_v11 = vld [vmem:[#allocation2 + $0xd0] sm:$0xff] }
 0x23b   : > { %v1175_v49 = vpop.permute.xlu0 %1174  ;;  %v1843_v10 = vld [vmem:[#allocation2 + $0x50] sm:$0xff]  ;;  %1245 = vst.msk [vmem:[#allocation2 + $0xe8] sm:$0x7f] %vm1216_vm15, %v1177_v62  ;;  %2567 = vmatprep.mubr.msk.f32.mxu1 %vm1877_vm5, %v1859_v11 }
 0x23c   : > { %1244 = vst.msk [vmem:[#allocation2 + $0xe0] sm:$0xff] %vm1214_vm13, %v1175_v49  ;;  %2543 = vmatprep.mubr.msk.f32.mxu0 %vm1877_vm5, %v1843_v10 }
 0x23d   : > { %1267 = vst.msk [vmem:[#allocation2 + $0xe0] sm:$0x1] %vm1252_vm14, %v2697_v0 }
 0x23e   : > { %v1767_v17 = vpop.permute.xlu1 %1766 }
 0x23f   : > { %v1735_v22 = vpop.permute.xlu0 %1734  ;;  %1830 = vst.msk [vmem:[#allocation2 + $0xd8] sm:$0x7f] %vm1803_vm6, %v1767_v17  ;;  %v2530_v23 = vpop.f32.mrf.mxu0 }
 0x240   : > { %1814 = vst.msk [vmem:[#allocation2 + $0x58] sm:$0x7f] %vm1803_vm6, %v1735_v22  ;;  %v2050_v24 = vadd.f32 %v2530_v23, %v3816_v20 }
 0x241   : > { %v2044_v25 = vpop.f32.mrf.mxu0 }
 0x242   : > { %v2204_v26 = vmax.f32 %v2050_v24, 0.0  ;;  %v2045_v27 = vadd.f32 %v3816_v20, %v2044_v25  ;;  %v1386_v28 = vpop.permute.xlu1 %1385 }
 0x243   : > { %v1354_v29 = vpop.permute.xlu0 %1353  ;;  %1448 = vst.msk [vmem:[#allocation2 + $0xe1] sm:$0xff] %vm1249_vm0, %v1386_v28 }
 0x244   : > { %1432 = vst.msk [vmem:[#allocation2 + $0x61] sm:$0xff] %vm1249_vm0, %v1354_v29  ;;  %v2554_v30 = vpop.f32.mrf.mxu1  ;;  %2236 = vst [vmem:[%s3826_s7 + $0x8] sm:$0xff] %v2204_v26  ;;  %v2203_v15 = vmax.f32 %v2045_v27, 0.0 }
 0x245   : > { %v2130_v31 = vadd.f32 %v2554_v30, %v3816_v20 }
 0x246   : > { %v2124_v16 = vpop.f32.mrf.mxu1  ;;  %2235 = vst [vmem:[%s3826_s7] sm:$0xff] %v2203_v15  ;;  %v1388_v33 = vpop.permute.xlu1 %1387  ;;  %v1860_v14 = vld [vmem:[#allocation2 + $0xd8] sm:$0xff] }
 0x247   : > { %v2220_v32 = vmax.f32 %v2130_v31, 0.0  ;;  %v2125_v5 = vadd.f32 %v3816_v20, %v2124_v16  ;;  %v1356_v34 = vpop.permute.xlu0 %1355  ;;  %v1844_v36 = vld [vmem:[#allocation2 + $0x58] sm:$0xff]  ;;  %1449 = vst.msk [vmem:[#allocation2 + $0xe9] sm:$0x7f] %vm1420_vm1, %v1388_v33  ;;  %2568 = vmatmul.mubr.msk.f32.gmra.mxu1 %vm1877_vm5, %v1860_v14 }
 0x248   : > { %1433 = vst.msk [vmem:[#allocation2 + $0x69] sm:$0x7f] %vm1420_vm1, %v1356_v34  ;;  %2544 = vmatmul.mubr.msk.f32.gmra.mxu0 %vm1877_vm5, %v1844_v36 }
 0x249   : > { %2252 = vst [vmem:[%s3826_s7 + $0x88] sm:$0xff] %v2220_v32  ;;  %v2219_v18 = vmax.f32 %v2125_v5, 0.0 }
 0x24a   : > { %v1570_v38 = vpop.permute.xlu1 %1569 }
 0x24b   : > { %2251 = vst [vmem:[%s3826_s7 + $0x80] sm:$0xff] %v2219_v18  ;;  %v1538_v39 = vpop.permute.xlu0 %1537  ;;  %1631 = vst.msk [vmem:[#allocation2 + $0xe0] sm:$0xff] %vm1450_vm2, %v1570_v38 }
 0x24c   : > { %1615 = vst.msk [vmem:[#allocation2 + $0x60] sm:$0xff] %vm1450_vm2, %v1538_v39 }
 0x24e   : > { %v939_v40 = vpop.permute.xlu1 %938 }
 0x24f   : > { %v937_v19 = vpop.permute.xlu0 %936  ;;  %1020 = vst.msk [vmem:[#allocation2 + $0x78] sm:$0xff] %vm1004_vm11, %v939_v40 }
 0x250   : > { %1019 = vst.msk [vmem:[#allocation2 + $0x70] sm:$0xff] %vm1004_vm11, %v937_v19 }
 0x251   : > { %1045 = vst.msk [vmem:[#allocation2 + $0x7f] sm:$0x1] %vm1037_vm12, %v2697_v0 }
 0x252   : > { %v1540_v41 = vpop.permute.xlu1 %1539 }
 0x253   : > { %v969_v4 = vpop.permute.xlu0 %968  ;;  %1616 = vst.msk [vmem:[#allocation2 + $0x68] sm:$0xff] %vm1450_vm2, %v1540_v41 }
 0x254   : > { %1035 = vst.msk [vmem:[#allocation2 + $0xf0] sm:$0xff] %vm1004_vm11, %v969_v4 }
 0x255   : > { %1643 = vst.msk [vmem:[#allocation2 + $0x6f] sm:$0x1] %vm1636_vm3, %v2697_v0 }
 0x256   : > { %v1737_v42 = vpop.permute.xlu1 %1736 }
 0x257   : > { %v1572_v51 = vpop.permute.xlu0 %1571  ;;  %1815 = vst.msk [vmem:[#allocation2 + $0x60] sm:$0xff] %vm1633_vm4, %v1737_v42 }
 0x258   : > { %1632 = vst.msk [vmem:[#allocation2 + $0xe8] sm:$0xff] %vm1450_vm2, %v1572_v51 }
 0x259   : > { %1651 = vst.msk [vmem:[#allocation2 + $0xef] sm:$0x1] %vm1636_vm3, %v2697_v0 }
 0x25a   : > { %v971_v2 = vpop.permute.xlu1 %970 }
 0x25b   : > { %v1769_v43 = vpop.permute.xlu0 %1768  ;;  %1036 = vst.msk [vmem:[#allocation2 + $0xf8] sm:$0xff] %vm1004_vm11, %v971_v2 }
 0x25c   : > { %1831 = vst.msk [vmem:[#allocation2 + $0xe0] sm:$0xff] %vm1633_vm4, %v1769_v43 }
 0x25d   : > { %1053 = vst.msk [vmem:[#allocation2 + $0xff] sm:$0x1] %vm1037_vm12, %v2697_v0 }
 0x25e   : > { %v1149_v12 = vpop.permute.xlu1 %1148  ;;  %v1845_v21 = vld [vmem:[#allocation2 + $0x60] sm:$0xff] }
 0x25f   : > { %v1147_v44 = vpop.permute.xlu0 %1146  ;;  %1231 = vst.msk [vmem:[#allocation2 + $0x78] sm:$0x7f] %vm1216_vm15, %v1149_v12  ;;  %2546 = vmatprep.mubr.msk.f32.mxu0 %vm1877_vm5, %v1845_v21 }
 0x260   : > { %1230 = vst.msk [vmem:[#allocation2 + $0x70] sm:$0xff] %vm1214_vm13, %v1147_v44 }
 0x261   : > { %1260 = vst.msk [vmem:[#allocation2 + $0x70] sm:$0x1] %vm1252_vm14, %v2697_v0 }
 0x262   : > { %v1739_v45 = vpop.permute.xlu1 %1738 }
 0x263   : > { %v1179_v47 = vpop.permute.xlu0 %1178  ;;  %v1861_v46 = vld [vmem:[#allocation2 + $0xe0] sm:$0xff]  ;;  %1816 = vst.msk [vmem:[#allocation2 + $0x68] sm:$0x7f] %vm1803_vm6, %v1739_v45 }
 0x264   : > { %1246 = vst.msk [vmem:[#allocation2 + $0xf0] sm:$0xff] %vm1214_vm13, %v1179_v47  ;;  %2570 = vmatprep.mubr.msk.f32.mxu1 %vm1877_vm5, %v1861_v46 }
 0x265   : > { %1250 = vst.msk [vmem:[#allocation2 + $0xf0] sm:$0xff] %vm1249_vm0, %v2697_v0 }
 0x266   : > { %1451 = vst.msk [vmem:[#allocation2 + $0xf0] sm:$0xff] %vm1450_vm2, %v2697_v0  ;;  %v1181_v63 = vpop.permute.xlu1 %1180 }
 0x267   : > { %1634 = vst.msk [vmem:[#allocation2 + $0xf0] sm:$0xff] %vm1633_vm4, %v2697_v0  ;;  %v1771_v35 = vpop.permute.xlu0 %1770  ;;  %v2533_v48 = vpop.f32.mrf.mxu0 }
 0x268   : > { %1832 = vst.msk [vmem:[#allocation2 + $0xe8] sm:$0x7f] %vm1803_vm6, %v1771_v35  ;;  %v2557_v50 = vpop.f32.mrf.mxu1  ;;  %v2060_v52 = vadd.f32 %v2533_v48, %v3816_v20 }
 0x269   : > { %1247 = vst.msk [vmem:[#allocation2 + $0xf8] sm:$0x7f] %vm1216_vm15, %v1181_v63  ;;  %v2140_v53 = vadd.f32 %v2557_v50, %v3816_v20  ;;  %v2054_v54 = vpop.f32.mrf.mxu0 }
 0x26a   : > { %1251 = vst.msk [vmem:[#allocation2 + $0xf8] sm:$0xff] %vm1249_vm0, %v2697_v0  ;;  %v2134_v6 = vpop.f32.mrf.mxu1  ;;  %v2206_v55 = vmax.f32 %v2060_v52, 0.0  ;;  %v2055_v7 = vadd.f32 %v3816_v20, %v2054_v54  ;;  %v1360_v57 = vpop.permute.xlu1 %1359  ;;  %v1846_v58 = vld [vmem:[#allocation2 + $0x68] sm:$0xff] }
 0x26b   : > { %1452 = vst.msk [vmem:[#allocation2 + $0xf8] sm:$0xff] %vm1450_vm2, %v2697_v0  ;;  %v2222_v56 = vmax.f32 %v2140_v53, 0.0  ;;  %v2135_v1 = vadd.f32 %v3816_v20, %v2134_v6  ;;  %v1358_v13 = vpop.permute.xlu0 %1357  ;;  %2547 = vmatmul.mubr.msk.f32.gmra.mxu0 %vm1877_vm5, %v1846_v58 }
 0x26c   : > { %1635 = vst.msk [vmem:[#allocation2 + $0xf8] sm:$0xff] %vm1633_vm4, %v2697_v0  ;;  %2238 = vst [vmem:[%s3826_s7 + $0x18] sm:$0xff] %v2206_v55  ;;  %v2205_v3 = vmax.f32 %v2055_v7, 0.0 }
 0x26d   : > { %1434 = vst.msk [vmem:[#allocation2 + $0x71] sm:$0xff] %vm1249_vm0, %v1358_v13  ;;  %2254 = vst [vmem:[%s3826_s7 + $0x98] sm:$0xff] %v2222_v56  ;;  %v2221_v8 = vmax.f32 %v2135_v1, 0.0 }
 0x26e   : > { %1435 = vst.msk [vmem:[#allocation2 + $0x79] sm:$0x7f] %vm1420_vm1, %v1360_v57  ;;  %v1863_v59 = vld [vmem:[#allocation2 + $0xf0] sm:$0xff]  ;;  %2237 = vst [vmem:[%s3826_s7 + $0x10] sm:$0xff] %v2205_v3  ;;  %v1544_v37 = vpop.permute.xlu1 %1543 }
 0x26f   : > { %2253 = vst [vmem:[%s3826_s7 + $0x90] sm:$0xff] %v2221_v8  ;;  %v1542_v60 = vpop.permute.xlu0 %1541  ;;  %v1862_v9 = vld [vmem:[#allocation2 + $0xe8] sm:$0xff]  ;;  %1618 = vst.msk [vmem:[#allocation2 + $0x78] sm:$0xff] %vm1450_vm2, %v1544_v37 }
 0x270   : > { %1617 = vst.msk [vmem:[#allocation2 + $0x70] sm:$0xff] %vm1450_vm2, %v1542_v60  ;;  %2571 = vmatmul.mubr.msk.f32.gmra.mxu1 %vm1877_vm5, %v1862_v9 }
 0x271   : > { %1644 = vst.msk [vmem:[#allocation2 + $0x7f] sm:$0x1] %vm1636_vm3, %v2697_v0  ;;  %2573 = vmatprep.mubr.msk.f32.mxu1 %vm1877_vm5, %v1863_v59 }
 0x272   : > { %v1743_v49 = vpop.permute.xlu1 %1742 }
 0x273   : > { %v1864_v61 = vld [vmem:[#allocation2 + $0xf8] sm:$0xff]  ;;  %v1741_v62 = vpop.permute.xlu0 %1740  ;;  %1818 = vst.msk [vmem:[#allocation2 + $0x78] sm:$0x7f] %vm1803_vm6, %v1743_v49 }
 0x274   : > { %1817 = vst.msk [vmem:[#allocation2 + $0x70] sm:$0xff] %vm1633_vm4, %v1741_v62  ;;  %2574 = vmatmul.mubr.msk.f32.gmra.mxu1 %vm1877_vm5, %v1864_v61 }
 0x27a   : > { %v1848_v11 = vld [vmem:[#allocation2 + $0x78] sm:$0xff] }
 0x27b   : > { %v1847_v10 = vld [vmem:[#allocation2 + $0x70] sm:$0xff] }
 0x27c   : > { %2549 = vmatprep.mubr.msk.f32.mxu0 %vm1877_vm5, %v1847_v10 }
 0x27d   : > { %2550 = vmatmul.mubr.msk.f32.gmra.mxu0 %vm1877_vm5, %v1848_v11 }
 0x28f   : > { %v2536_v0 = vpop.f32.mrf.mxu0 }
 0x290   : > { %v2560_v17 = vpop.f32.mrf.mxu1  ;;  %v2070_v22 = vadd.f32 %v2536_v0, %v3816_v20 }
 0x291   : > { %v2150_v23 = vadd.f32 %v2560_v17, %v3816_v20  ;;  %v2064_v24 = vpop.f32.mrf.mxu0 }
 0x292   : > { %v2144_v25 = vpop.f32.mrf.mxu1  ;;  %v2208_v26 = vmax.f32 %v2070_v22, 0.0  ;;  %v2065_v28 = vadd.f32 %v3816_v20, %v2064_v24 }
 0x293   : > { %v2224_v27 = vmax.f32 %v2150_v23, 0.0  ;;  %v2145_v29 = vadd.f32 %v3816_v20, %v2144_v25 }
 0x294   : > { %2240 = vst [vmem:[%s3826_s7 + $0x28] sm:$0xff] %v2208_v26  ;;  %v2207_v30 = vmax.f32 %v2065_v28, 0.0 }
 0x295   : > { %2256 = vst [vmem:[%s3826_s7 + $0xa8] sm:$0xff] %v2224_v27  ;;  %v2223_v15 = vmax.f32 %v2145_v29, 0.0 }
 0x296   : > { %2239 = vst [vmem:[%s3826_s7 + $0x20] sm:$0xff] %v2207_v30 }
 0x297   : > { %2255 = vst [vmem:[%s3826_s7 + $0xa0] sm:$0xff] %v2223_v15 }
 0x2b7   : > { %v2563_v16 = vpop.f32.mrf.mxu1 }
 0x2b8   : > { %v2539_v31 = vpop.f32.mrf.mxu0  ;;  %v2160_v5 = vadd.f32 %v2563_v16, %v3816_v20 }
 0x2b9   : > { %v2080_v32 = vadd.f32 %v2539_v31, %v3816_v20  ;;  %v2154_v34 = vpop.f32.mrf.mxu1 }
 0x2ba   : > { %v2074_v33 = vpop.f32.mrf.mxu0  ;;  %v2226_v14 = vmax.f32 %v2160_v5, 0.0  ;;  %v2155_v38 = vadd.f32 %v3816_v20, %v2154_v34 }
 0x2bb   : > { %v2210_v36 = vmax.f32 %v2080_v32, 0.0  ;;  %v2075_v18 = vadd.f32 %v3816_v20, %v2074_v33 }
 0x2bc   : > { %2258 = vst [vmem:[%s3826_s7 + $0xb8] sm:$0xff] %v2226_v14  ;;  %v2225_v40 = vmax.f32 %v2155_v38, 0.0 }
 0x2bd   : > { %2242 = vst [vmem:[%s3826_s7 + $0x38] sm:$0xff] %v2210_v36  ;;  %v2209_v39 = vmax.f32 %v2075_v18, 0.0 }
 0x2be   : > { %2257 = vst [vmem:[%s3826_s7 + $0xb0] sm:$0xff] %v2225_v40 }
 0x2bf   : > { %2241 = vst [vmem:[%s3826_s7 + $0x30] sm:$0xff] %v2209_v39 }
 0x2df   : > { %v2566_v41 = vpop.f32.mrf.mxu1 }
 0x2e0   : > { %v2542_v19 = vpop.f32.mrf.mxu0  ;;  %v2170_v42 = vadd.f32 %v2566_v41, %v3816_v20 }
 0x2e1   : > { %v2090_v4 = vadd.f32 %v2542_v19, %v3816_v20  ;;  %v2164_v2 = vpop.f32.mrf.mxu1 }
 0x2e2   : > { %v2084_v51 = vpop.f32.mrf.mxu0  ;;  %v2228_v12 = vmax.f32 %v2170_v42, 0.0  ;;  %v2165_v21 = vadd.f32 %v3816_v20, %v2164_v2 }
 0x2e3   : > { %v2212_v43 = vmax.f32 %v2090_v4, 0.0  ;;  %v2085_v44 = vadd.f32 %v3816_v20, %v2084_v51 }
 0x2e4   : > { %2260 = vst [vmem:[%s3826_s7 + $0xc8] sm:$0xff] %v2228_v12  ;;  %v2227_v47 = vmax.f32 %v2165_v21, 0.0 }
 0x2e5   : > { %2244 = vst [vmem:[%s3826_s7 + $0x48] sm:$0xff] %v2212_v43  ;;  %v2211_v45 = vmax.f32 %v2085_v44, 0.0 }
 0x2e6   : > { %2259 = vst [vmem:[%s3826_s7 + $0xc0] sm:$0xff] %v2227_v47 }
 0x2e7   : > { %2243 = vst [vmem:[%s3826_s7 + $0x40] sm:$0xff] %v2211_v45 }
 0x307   : > { %v2569_v35 = vpop.f32.mrf.mxu1 }
 0x308   : > { %v2545_v46 = vpop.f32.mrf.mxu0  ;;  %v2180_v48 = vadd.f32 %v2569_v35, %v3816_v20 }
 0x309   : > { %v2100_v63 = vadd.f32 %v2545_v46, %v3816_v20  ;;  %v2174_v52 = vpop.f32.mrf.mxu1 }
 0x30a   : > { %v2094_v50 = vpop.f32.mrf.mxu0  ;;  %v2230_v54 = vmax.f32 %v2180_v48, 0.0  ;;  %v2175_v55 = vadd.f32 %v3816_v20, %v2174_v52 }
 0x30b   : > { %v2214_v53 = vmax.f32 %v2100_v63, 0.0  ;;  %v2095_v6 = vadd.f32 %v3816_v20, %v2094_v50 }
 0x30c   : > { %2262 = vst [vmem:[%s3826_s7 + $0xd8] sm:$0xff] %v2230_v54  ;;  %v2229_v7 = vmax.f32 %v2175_v55, 0.0 }
 0x30d   : > { %2246 = vst [vmem:[%s3826_s7 + $0x58] sm:$0xff] %v2214_v53  ;;  %v2213_v56 = vmax.f32 %v2095_v6, 0.0 }
 0x30e   : > { %2261 = vst [vmem:[%s3826_s7 + $0xd0] sm:$0xff] %v2229_v7 }
 0x30f   : > { %2245 = vst [vmem:[%s3826_s7 + $0x50] sm:$0xff] %v2213_v56 }
 0x32b   : > { %v2548_v1 = vpop.f32.mrf.mxu0 }
 0x32c   : > { %v2110_v13 = vadd.f32 %v2548_v1, %v3816_v20 }
 0x32d   : > { %v2104_v57 = vpop.f32.mrf.mxu0 }
 0x32e   : > { %v2216_v58 = vmax.f32 %v2110_v13, 0.0  ;;  %v2105_v3 = vadd.f32 %v3816_v20, %v2104_v57 }
 0x330   : > { %v2572_v8 = vpop.f32.mrf.mxu1  ;;  %2248 = vst [vmem:[%s3826_s7 + $0x68] sm:$0xff] %v2216_v58  ;;  %v2215_v59 = vmax.f32 %v2105_v3, 0.0 }
 0x331   : > { %v2190_v60 = vadd.f32 %v2572_v8, %v3816_v20 }
 0x332   : > { %v2184_v37 = vpop.f32.mrf.mxu1  ;;  %2247 = vst [vmem:[%s3826_s7 + $0x60] sm:$0xff] %v2215_v59 }
 0x333   : > { %v2232_v9 = vmax.f32 %v2190_v60, 0.0  ;;  %v2185_v61 = vadd.f32 %v3816_v20, %v2184_v37 }
 0x334   : > { %v2575_v62 = vpop.f32.mrf.mxu1 }
 0x335   : > { %2264 = vst [vmem:[%s3826_s7 + $0xe8] sm:$0xff] %v2232_v9  ;;  %v2231_v49 = vmax.f32 %v2185_v61, 0.0  ;;  %v2200_v10 = vadd.f32 %v2575_v62, %v3816_v20 }
 0x336   : > { %v2194_v11 = vpop.f32.mrf.mxu1 }
 0x337   : > { %2263 = vst [vmem:[%s3826_s7 + $0xe0] sm:$0xff] %v2231_v49  ;;  %v2234_v0 = vmax.f32 %v2200_v10, 0.0  ;;  %v2195_v17 = vadd.f32 %v3816_v20, %v2194_v11 }
 0x339   : > { %2266 = vst [vmem:[%s3826_s7 + $0xf8] sm:$0xff] %v2234_v0  ;;  %v2233_v22 = vmax.f32 %v2195_v17, 0.0 }
 0x33b   : > { %2265 = vst [vmem:[%s3826_s7 + $0xf0] sm:$0xff] %v2233_v22 }
 0x33d   : > { %v2551_v23 = vpop.f32.mrf.mxu0 }
 0x33e   : > { %v2120_v24 = vadd.f32 %v2551_v23, %v3816_v20 }
 0x33f   : > { %v2114_v25 = vpop.f32.mrf.mxu0 }
 0x340   : > { %v2218_v26 = vmax.f32 %v2120_v24, 0.0  ;;  %v2115_v27 = vadd.f32 %v3816_v20, %v2114_v25 }
 0x342   : > { %2250 = vst [vmem:[%s3826_s7 + $0x78] sm:$0xff] %v2218_v26  ;;  %v2217_v28 = vmax.f32 %v2115_v27, 0.0 }
 0x344   : > { %2249 = vst [vmem:[%s3826_s7 + $0x70] sm:$0xff] %v2217_v28 }
 0x345   : > { %2648 = shalt.err (!%p2645_p3)
}
 0x346   : > { %s2649_s26 = scalar_lea.hbm %s3951_s17, 4096  ;;  %s2653_s28 = scalar_lea.hbm %s4003_s3, 8192 }
 0x347   : > { %p2650_p4 = scmp.ne.s32.totalorder %s3951_s17, %s2649_s26  ;;  %p2654_p9 = scmp.lt.s32.totalorder %s3951_s17, %s4003_s3 }
 0x348   : > { %p2655_p10 = scmp.lt.s32.totalorder %s2653_s28, %s2649_s26 }
 0x349   : > { %p2651_p7 = pnand %p2650_p4, %p2766_p5 }
 0x34a   : > { %p2656_p11 = por %p2655_p10, %p2654_p9 }
 0x34b   : > { %p2652_p8 = pneg %p2651_p7 }
 0x34d   : > { %p2657_p12 = pnand %p2656_p11, %p2652_p8 }
 0x34f   : > { %2660 = shalt.err (!%p2657_p12)
}
 0x350   : > { %s2707_s6 = smov 128  }
 0x351   : > { %2586 = dma.vmem_to_hbm [thread:$0]  (%p2766_p5), %s3954_s9, 4096, %s3951_s17, %s3959_s16, %s2707_s6, %s2707_s6, %s2699_s30  }
 0x352 PF: > { %p2592_p13 = scmp.ge.s32.totalorder %s2695_s15, 2  ;;  %s2296_s7 = sand.u32 1, %s2683_s12  }
 0x353   : > { %s2297_s8 = scalar_lea.sflag [#allocation4], %s2296_s7 }
 0x354   : > { %p2589_p0 = pnand %p2592_p13, %p2770_p6 }
 0x356   : > { %p2590_p1 = pneg %p2589_p0 }
 0x358   : > { %2678 = dma.done.wait (%p2590_p1), %s2297_s8, 4096  }
 0x359   : > { %2680 = vsyncadd (%p2590_p1), %s2297_s8, 4294963200  ;;  %p13_p2 = scmp.ge.s32.totalorder %s2753_s18, 4   ;;  %s4006_s12 = smov %s2687_s13 }
 0x35a   : > { %s4007_s13 = smov %s2691_s14  ;;  %s4008_s14 = smov %s2764_s21 }
 0x35b   : > { %s4009_s15 = smov %s2753_s18  ;;  %15 = sbr.rel (!%p13_p2) target bundleno = 3 (0x3), region = 70 }
 0x360   :  { %2302 = vsyncpa [#allocation4], 1 }
 0x361   :  { %2304 = vsyncpa [#allocation4 + $0x1], 1 }

</bundles_post_ra>
